<compile_context>
chip_gen: v7x
topology: tpu7x:2x2x1
jax: 0.10.0
libtpu: 0.0.40
codegen_flags: <defaults>
</compile_context>

<pallas_src>
import numpy as np
import jax
import jax.numpy as jnp
from jax import lax
from jax.experimental import pallas as pl
from jax.experimental.pallas import tpu as pltpu

D = 8                    # embedding dim (module's `d`)
SIZE_VERTEX = 16         # synthetic graph size
# TODO(synk): original reads 'temp_core_60.adjlist' to get size_vertex; no file I/O here.
SUBS = 8                 # sublanes per output tile
LANES = 128              # lanes per output tile
TILE = SUBS * LANES      # samples processed per grid step (1024)


# ----------------------- host-side tree helpers (spec) -----------------------
def func_L(w):
    count = 1
    while w != 1:
        count += 1
        w //= 2
    return count


def func_n(w, j):
    li = [w]
    while w != 1:
        w = w // 2
        li.append(w)
    li.reverse()
    return li[j]


# Maximum number of internal-node steps on any root->leaf path for this graph size.
MAX_DEPTH = max(max(func_L(SIZE_VERTEX + wo) - 2 for wo in range(SIZE_VERTEX)), 1)


def _build_tables():
    """Per-vertex path tables, computed once at model init (SIZE_VERTEX rows).

    node_tbl[wo, k] = func_n(size_vertex + wo, k + 1)   for k < L-2, else 0
    sign_tbl[wo, k] = +1 / -1 (left/right child test)   for k < L-2, else 0 (=> skip)
    """
    node_tbl = np.zeros((SIZE_VERTEX, MAX_DEPTH), np.int32)
    sign_tbl = np.zeros((SIZE_VERTEX, MAX_DEPTH), np.float32)
    for wo in range(SIZE_VERTEX):
        w = SIZE_VERTEX + wo
        for j in range(1, func_L(w) - 1):
            k = j - 1
            node_tbl[wo, k] = func_n(w, j)
            sign_tbl[wo, k] = 1.0 if func_n(w, j + 1) == 2 * func_n(w, j) else -1.0
    return node_tbl, sign_tbl


# ------------------------------- Pallas kernel -------------------------------
def hs_kernel(wi_ref, nodes_ref, signs_ref, phi_ref, prob_ref, out_ref):
    """One grid step = one tile of SUBS*LANES samples; one unmasked (8,128) store."""
    phi = phi_ref[...]                       # (SV, D)   resident table
    prob = prob_ref[...]                     # (2*SV, D) resident table
    wi = wi_ref[0]                           # (SUBS, LANES) int32
    nodes = nodes_ref[0]                     # (MAX_DEPTH, SUBS, LANES) int32
    signs = signs_ref[0]                     # (MAX_DEPTH, SUBS, LANES) f32 (+1/-1, 0=pad)

    # M[n, v] = dot(prob_tensor[n], phi[v]) — all node/vertex dots in one MXU matmul.
    m = jnp.dot(prob, phi.T, preferred_element_type=jnp.float32)    # (2*SV, SV)

    v_iota = lax.broadcasted_iota(jnp.int32, (SIZE_VERTEX, LANES), 0)
    n_iota = lax.broadcasted_iota(jnp.int32, (2 * SIZE_VERTEX, LANES), 0)

    rows = []
    for r in range(SUBS):                    # 8 rows of 128 samples (static unroll)
        # f32 one-hot gather of this row's wi: T[n, s] = dot(prob[n], phi[wi[s]])
        oh = (v_iota == wi[r:r + 1, :]).astype(jnp.float32)          # (SV, LANES)
        t = jnp.dot(m, oh, preferred_element_type=jnp.float32)       # (2*SV, LANES)

        p = jnp.ones((1, LANES), jnp.float32)
        # TODO(synk): if MAX_DEPTH grows (bigger graphs) switch to lax.fori_loop(..., unroll=True).
        for k in range(MAX_DEPTH):
            sm = signs[k, r:r + 1, :]                                # (1, LANES)
            node = nodes[k, r:r + 1, :]                              # (1, LANES)
            # Select this sample's tree-node dot product: sublane one-hot + reduce.
            dk = jnp.sum(jnp.where(n_iota == node, t, 0.0),
                         axis=0, keepdims=True)                      # (1, LANES)
            denom = 1.0 + jnp.exp(-sm * dk)
            recip = pl.reciprocal(denom, approx=True)                # EUP slot
            recip = recip * (2.0 - denom * recip)                    # one Newton step
            p = p * jnp.where(sm == 0.0, 1.0, recip)                 # padded depth -> 1.0
        rows.append(p)

    out_ref[0] = jnp.concatenate(rows, axis=0)   # (SUBS, LANES): single unmasked store


def _hs_forward_impl(phi, prob, node_table, sign_table, wi, wo):
    """Whole batch -> probabilities, one pallas_call (runs under jit)."""
    b = wi.shape[0]
    nodes = node_table[wo]                       # (B, MAX_DEPTH) device gather
    signs = sign_table[wo]                       # (B, MAX_DEPTH)
    pad = (-b) % TILE
    if pad:
        wi = jnp.pad(wi, (0, pad))
        nodes = jnp.pad(nodes, ((0, pad), (0, 0)))
        signs = jnp.pad(signs, ((0, pad), (0, 0)))   # sign 0 => padded samples give p=1
    nb = (b + pad) // TILE

    wi_t = wi.reshape(nb, SUBS, LANES)
    nodes_t = jnp.transpose(nodes.reshape(nb, SUBS, LANES, MAX_DEPTH), (0, 3, 1, 2))
    signs_t = jnp.transpose(signs.reshape(nb, SUBS, LANES, MAX_DEPTH), (0, 3, 1, 2))

    out = pl.pallas_call(
        hs_kernel,
        out_shape=jax.ShapeDtypeStruct((nb, SUBS, LANES), jnp.float32),
        grid_spec=pltpu.PrefetchScalarGridSpec(
            num_scalar_prefetch=0,
            grid=(nb,),
            in_specs=[
                pl.BlockSpec((1, SUBS, LANES), lambda i: (i, 0, 0)),
                pl.BlockSpec((1, MAX_DEPTH, SUBS, LANES), lambda i: (i, 0, 0, 0)),
                pl.BlockSpec((1, MAX_DEPTH, SUBS, LANES), lambda i: (i, 0, 0, 0)),
                # Embedding tables: constant index_map -> DMA'd once, VMEM-resident.
                pl.BlockSpec((SIZE_VERTEX, D), lambda i: (0, 0)),
                pl.BlockSpec((2 * SIZE_VERTEX, D), lambda i: (0, 0)),
            ],
            out_specs=pl.BlockSpec((1, SUBS, LANES), lambda i: (i, 0, 0)),
        ),
        compiler_params=pltpu.CompilerParams(dimension_semantics=("parallel",)),
    )(wi_t, nodes_t, signs_t, phi, prob)

    return out.reshape(nb * TILE)[:b]


_hs_forward_jit = jax.jit(_hs_forward_impl)


# ------------------------------- module wrapper --------------------------------
class HierarchicalModel:
    """JAX/Pallas port of the DeepWalk HierarchicalModel (hierarchical softmax)."""

    def __init__(self, key):
        k1, k2 = jax.random.split(key)
        # torch.rand -> uniform [0, 1)
        self.phi = jax.random.uniform(k1, (SIZE_VERTEX, D), dtype=jnp.float32)
        self.prob_tensor = jax.random.uniform(k2, (2 * SIZE_VERTEX, D), dtype=jnp.float32)
        node_tbl, sign_tbl = _build_tables()
        self.node_table = jnp.asarray(node_tbl)
        self.sign_table = jnp.asarray(sign_tbl)
        # TODO(synk): no autograd/training here — forward pass only.

    def forward_batch(self, wi, wo):
        """p[i] for every (wi[i], wo[i]) pair; single kernel launch for the batch."""
        wi = jnp.asarray(np.asarray(wi, np.int32).reshape(-1))
        wo = jnp.asarray(np.asarray(wo, np.int32).reshape(-1))
        return _hs_forward_jit(self.phi, self.prob_tensor,
                               self.node_table, self.sign_table, wi, wo)

    def forward(self, wi, wo):
        """Single-sample API matching the torch module; returns shape (1,)."""
        return self.forward_batch(np.asarray([wi]), np.asarray([wo]))

    # per-sample reference mirroring the original torch loop (float64, host)
    def forward_ref(self, wi, wo):
        phi = np.asarray(self.phi, np.float64)
        prob = np.asarray(self.prob_tensor, np.float64)
        w = SIZE_VERTEX + int(wo)
        h = phi[int(wi)]
        p = 1.0
        for j in range(1, func_L(w) - 1):
            mult = 1.0 if func_n(w, j + 1) == 2 * func_n(w, j) else -1.0
            p = p * (1.0 / (1.0 + np.exp(-mult * float(np.dot(prob[func_n(w, j)], h)))))
        return np.float64(p)


if __name__ == "__main__":
    key = jax.random.PRNGKey(0)
    k_param, k_wi, k_wo = jax.random.split(key, 3)
    model = HierarchicalModel(k_param)

    # 2048 (wi, wo) samples -> grid (2,): two full 8x128 tiles, one per v7x TensorCore.
    B = 2 * TILE
    wi = np.asarray(jax.random.randint(k_wi, (B,), 0, SIZE_VERTEX), np.int32)
    wo = np.asarray(jax.random.randint(k_wo, (B,), 0, SIZE_VERTEX), np.int32)

    p = jax.block_until_ready(model.forward_batch(wi, wo))

    ref = np.asarray([model.forward_ref(a, b) for a, b in zip(wi, wo)], np.float64)
    np.testing.assert_allclose(np.asarray(p, np.float64), ref, rtol=1e-4, atol=1e-6)

    # single-sample API still matches the torch module's forward(wi, wo) -> shape (1,)
    p1 = jax.block_until_ready(model.forward(3, 11))
    np.testing.assert_allclose(np.asarray(p1, np.float64),
                               np.asarray([model.forward_ref(3, 11)]),
                               rtol=1e-4, atol=1e-6)

    print("KERNEL_OK")
</pallas_src>

<mosaic_0001>
module attributes {stable_mosaic.version = 11 : i64} {
  func.func @hs_kernel(%arg0: i32, %arg1: memref<1x8x128xi32, #tpu.memory_space<vmem>>, %arg2: memref<1x3x8x128xi32, #tpu.memory_space<vmem>>, %arg3: memref<1x3x8x128xf32, #tpu.memory_space<vmem>>, %arg4: memref<16x8xf32, #tpu.memory_space<vmem>>, %arg5: memref<32x8xf32, #tpu.memory_space<vmem>>, %arg6: memref<1x8x128xf32, #tpu.memory_space<vmem>>) attributes {dimension_semantics = [#tpu.dimension_semantics<parallel>], iteration_bounds = array<i64: 2>, scalar_prefetch = 0 : i64, scratch_operands = 0 : i64, tpu.core_type = #tpu.core_type<tc>, window_params = [{transform_indices = @transform_0, window_bounds = array<i64: 1, 8, 128>}, {transform_indices = @transform_1, window_bounds = array<i64: 1, 3, 8, 128>}, {transform_indices = @transform_2, window_bounds = array<i64: 1, 3, 8, 128>}, {pipeline_mode = #tpu.pipeline_mode<synchronous>, transform_indices = @transform_3, window_bounds = array<i64: 16, 8>}, {pipeline_mode = #tpu.pipeline_mode<synchronous>, transform_indices = @transform_4, window_bounds = array<i64: 32, 8>}, {transform_indices = @transform_5, window_bounds = array<i64: 1, 8, 128>}]} {
    %c0 = arith.constant 0 : index
    %c0_0 = arith.constant 0 : index
    %0 = vector.load %arg4[%c0, %c0_0] : memref<16x8xf32, #tpu.memory_space<vmem>>, vector<16x8xf32>
    %c0_1 = arith.constant 0 : index
    %c0_2 = arith.constant 0 : index
    %1 = vector.load %arg5[%c0_1, %c0_2] : memref<32x8xf32, #tpu.memory_space<vmem>>, vector<32x8xf32>
    %c0_3 = arith.constant 0 : index
    %c0_4 = arith.constant 0 : index
    %c0_5 = arith.constant 0 : index
    %2 = vector.load %arg1[%c0_3, %c0_4, %c0_5] : memref<1x8x128xi32, #tpu.memory_space<vmem>>, vector<1x8x128xi32>
    %3 = vector.shape_cast %2 : vector<1x8x128xi32> to vector<8x128xi32>
    %c0_6 = arith.constant 0 : index
    %c0_7 = arith.constant 0 : index
    %c0_8 = arith.constant 0 : index
    %c0_9 = arith.constant 0 : index
    %4 = vector.load %arg2[%c0_6, %c0_7, %c0_8, %c0_9] : memref<1x3x8x128xi32, #tpu.memory_space<vmem>>, vector<1x3x8x128xi32>
    %5 = vector.shape_cast %4 : vector<1x3x8x128xi32> to vector<3x8x128xi32>
    %c0_10 = arith.constant 0 : index
    %c0_11 = arith.constant 0 : index
    %c0_12 = arith.constant 0 : index
    %c0_13 = arith.constant 0 : index
    %6 = vector.load %arg3[%c0_10, %c0_11, %c0_12, %c0_13] : memref<1x3x8x128xf32, #tpu.memory_space<vmem>>, vector<1x3x8x128xf32>
    %7 = vector.shape_cast %6 : vector<1x3x8x128xf32> to vector<3x8x128xf32>
    %8 = tpu.transpose %0, [1, 0] : vector<16x8xf32> -> vector<8x16xf32>
    %cst = arith.constant dense<0.000000e+00> : vector<32x16xf32>
    %9 = tpu.matmul %1, %8, %cst {dimension_numbers = #tpu.dot_dimension_numbers<[1], [0], [0], [1], [0, 0, 1, 1], [], []>} : vector<32x8xf32>, vector<8x16xf32>, vector<32x16xf32> -> vector<32x16xf32>
    %10 = tpu.iota {dimensions = array<i32: 0>} : vector<16x128xi32>
    %11 = tpu.iota {dimensions = array<i32: 0>} : vector<32x128xi32>
    %12 = vector.extract_strided_slice %3 {offsets = [0, 0], sizes = [1, 128], strides = [1, 1]} : vector<8x128xi32> to vector<1x128xi32>
    %13 = vector.broadcast %12 : vector<1x128xi32> to vector<16x128xi32>
    %14 = arith.cmpi eq, %10, %13 : vector<16x128xi32>
    %15 = arith.extui %14 : vector<16x128xi1> to vector<16x128xi32>
    %16 = arith.sitofp %15 : vector<16x128xi32> to vector<16x128xf32>
    %cst_14 = arith.constant dense<0.000000e+00> : vector<32x128xf32>
    %17 = tpu.matmul %9, %16, %cst_14 {dimension_numbers = #tpu.dot_dimension_numbers<[1], [0], [0], [1], [0, 0, 1, 1], [], []>} : vector<32x16xf32>, vector<16x128xf32>, vector<32x128xf32> -> vector<32x128xf32>
    %cst_15 = arith.constant 1.000000e+00 : f32
    %18 = vector.broadcast %cst_15 : f32 to vector<1x128xf32>
    %19 = vector.extract_strided_slice %7 {offsets = [0, 0, 0], sizes = [1, 1, 128], strides = [1, 1, 1]} : vector<3x8x128xf32> to vector<1x1x128xf32>
    %20 = vector.shape_cast %19 : vector<1x1x128xf32> to vector<1x128xf32>
    %21 = vector.extract_strided_slice %5 {offsets = [0, 0, 0], sizes = [1, 1, 128], strides = [1, 1, 1]} : vector<3x8x128xi32> to vector<1x1x128xi32>
    %22 = vector.shape_cast %21 : vector<1x1x128xi32> to vector<1x128xi32>
    %23 = vector.broadcast %22 : vector<1x128xi32> to vector<32x128xi32>
    %24 = arith.cmpi eq, %11, %23 : vector<32x128xi32>
    %cst_16 = arith.constant 0.000000e+00 : f32
    %25 = vector.broadcast %cst_16 : f32 to vector<32x128xf32>
    %26 = arith.select %24, %17, %25 : vector<32x128xi1>, vector<32x128xf32>
    %cst_17 = arith.constant dense<0.000000e+00> : vector<128xf32>
    %27 = vector.multi_reduction <add>, %26, %cst_17 [0] : vector<32x128xf32> to vector<128xf32>
    %28 = vector.shape_cast %27 : vector<128xf32> to vector<1x128xf32>
    %cst_18 = arith.constant 0.000000e+00 : f32
    %29 = vector.broadcast %cst_18 : f32 to vector<1x128xf32>
    %30 = arith.subf %29, %20 : vector<1x128xf32>
    %31 = arith.mulf %30, %28 : vector<1x128xf32>
    %32 = math.exp %31 : vector<1x128xf32>
    %cst_19 = arith.constant 1.000000e+00 : f32
    %33 = vector.broadcast %cst_19 : f32 to vector<1x128xf32>
    %34 = arith.addf %33, %32 : vector<1x128xf32>
    %35 = tpu.reciprocal %34 {approx = true} : vector<1x128xf32> -> vector<1x128xf32>
    %36 = arith.mulf %34, %35 : vector<1x128xf32>
    %cst_20 = arith.constant 2.000000e+00 : f32
    %37 = vector.broadcast %cst_20 : f32 to vector<1x128xf32>
    %38 = arith.subf %37, %36 : vector<1x128xf32>
    %39 = arith.mulf %35, %38 : vector<1x128xf32>
    %cst_21 = arith.constant 0.000000e+00 : f32
    %40 = vector.broadcast %cst_21 : f32 to vector<1x128xf32>
    %41 = arith.cmpf oeq, %20, %40 : vector<1x128xf32>
    %cst_22 = arith.constant 1.000000e+00 : f32
    %42 = vector.broadcast %cst_22 : f32 to vector<1x128xf32>
    %43 = arith.select %41, %42, %39 : vector<1x128xi1>, vector<1x128xf32>
    %44 = arith.mulf %18, %43 : vector<1x128xf32>
    %45 = vector.extract_strided_slice %7 {offsets = [1, 0, 0], sizes = [1, 1, 128], strides = [1, 1, 1]} : vector<3x8x128xf32> to vector<1x1x128xf32>
    %46 = vector.shape_cast %45 : vector<1x1x128xf32> to vector<1x128xf32>
    %47 = vector.extract_strided_slice %5 {offsets = [1, 0, 0], sizes = [1, 1, 128], strides = [1, 1, 1]} : vector<3x8x128xi32> to vector<1x1x128xi32>
    %48 = vector.shape_cast %47 : vector<1x1x128xi32> to vector<1x128xi32>
    %49 = vector.broadcast %48 : vector<1x128xi32> to vector<32x128xi32>
    %50 = arith.cmpi eq, %11, %49 : vector<32x128xi32>
    %cst_23 = arith.constant 0.000000e+00 : f32
    %51 = vector.broadcast %cst_23 : f32 to vector<32x128xf32>
    %52 = arith.select %50, %17, %51 : vector<32x128xi1>, vector<32x128xf32>
    %cst_24 = arith.constant dense<0.000000e+00> : vector<128xf32>
    %53 = vector.multi_reduction <add>, %52, %cst_24 [0] : vector<32x128xf32> to vector<128xf32>
    %54 = vector.shape_cast %53 : vector<128xf32> to vector<1x128xf32>
    %cst_25 = arith.constant 0.000000e+00 : f32
    %55 = vector.broadcast %cst_25 : f32 to vector<1x128xf32>
    %56 = arith.subf %55, %46 : vector<1x128xf32>
    %57 = arith.mulf %56, %54 : vector<1x128xf32>
    %58 = math.exp %57 : vector<1x128xf32>
    %cst_26 = arith.constant 1.000000e+00 : f32
    %59 = vector.broadcast %cst_26 : f32 to vector<1x128xf32>
    %60 = arith.addf %59, %58 : vector<1x128xf32>
    %61 = tpu.reciprocal %60 {approx = true} : vector<1x128xf32> -> vector<1x128xf32>
    %62 = arith.mulf %60, %61 : vector<1x128xf32>
    %cst_27 = arith.constant 2.000000e+00 : f32
    %63 = vector.broadcast %cst_27 : f32 to vector<1x128xf32>
    %64 = arith.subf %63, %62 : vector<1x128xf32>
    %65 = arith.mulf %61, %64 : vector<1x128xf32>
    %cst_28 = arith.constant 0.000000e+00 : f32
    %66 = vector.broadcast %cst_28 : f32 to vector<1x128xf32>
    %67 = arith.cmpf oeq, %46, %66 : vector<1x128xf32>
    %cst_29 = arith.constant 1.000000e+00 : f32
    %68 = vector.broadcast %cst_29 : f32 to vector<1x128xf32>
    %69 = arith.select %67, %68, %65 : vector<1x128xi1>, vector<1x128xf32>
    %70 = arith.mulf %44, %69 : vector<1x128xf32>
    %71 = vector.extract_strided_slice %7 {offsets = [2, 0, 0], sizes = [1, 1, 128], strides = [1, 1, 1]} : vector<3x8x128xf32> to vector<1x1x128xf32>
    %72 = vector.shape_cast %71 : vector<1x1x128xf32> to vector<1x128xf32>
    %73 = vector.extract_strided_slice %5 {offsets = [2, 0, 0], sizes = [1, 1, 128], strides = [1, 1, 1]} : vector<3x8x128xi32> to vector<1x1x128xi32>
    %74 = vector.shape_cast %73 : vector<1x1x128xi32> to vector<1x128xi32>
    %75 = vector.broadcast %74 : vector<1x128xi32> to vector<32x128xi32>
    %76 = arith.cmpi eq, %11, %75 : vector<32x128xi32>
    %cst_30 = arith.constant 0.000000e+00 : f32
    %77 = vector.broadcast %cst_30 : f32 to vector<32x128xf32>
    %78 = arith.select %76, %17, %77 : vector<32x128xi1>, vector<32x128xf32>
    %cst_31 = arith.constant dense<0.000000e+00> : vector<128xf32>
    %79 = vector.multi_reduction <add>, %78, %cst_31 [0] : vector<32x128xf32> to vector<128xf32>
    %80 = vector.shape_cast %79 : vector<128xf32> to vector<1x128xf32>
    %cst_32 = arith.constant 0.000000e+00 : f32
    %81 = vector.broadcast %cst_32 : f32 to vector<1x128xf32>
    %82 = arith.subf %81, %72 : vector<1x128xf32>
    %83 = arith.mulf %82, %80 : vector<1x128xf32>
    %84 = math.exp %83 : vector<1x128xf32>
    %cst_33 = arith.constant 1.000000e+00 : f32
    %85 = vector.broadcast %cst_33 : f32 to vector<1x128xf32>
    %86 = arith.addf %85, %84 : vector<1x128xf32>
    %87 = tpu.reciprocal %86 {approx = true} : vector<1x128xf32> -> vector<1x128xf32>
    %88 = arith.mulf %86, %87 : vector<1x128xf32>
    %cst_34 = arith.constant 2.000000e+00 : f32
    %89 = vector.broadcast %cst_34 : f32 to vector<1x128xf32>
    %90 = arith.subf %89, %88 : vector<1x128xf32>
    %91 = arith.mulf %87, %90 : vector<1x128xf32>
    %cst_35 = arith.constant 0.000000e+00 : f32
    %92 = vector.broadcast %cst_35 : f32 to vector<1x128xf32>
    %93 = arith.cmpf oeq, %72, %92 : vector<1x128xf32>
    %cst_36 = arith.constant 1.000000e+00 : f32
    %94 = vector.broadcast %cst_36 : f32 to vector<1x128xf32>
    %95 = arith.select %93, %94, %91 : vector<1x128xi1>, vector<1x128xf32>
    %96 = arith.mulf %70, %95 : vector<1x128xf32>
    %97 = vector.extract_strided_slice %3 {offsets = [1, 0], sizes = [1, 128], strides = [1, 1]} : vector<8x128xi32> to vector<1x128xi32>
    %98 = vector.broadcast %97 : vector<1x128xi32> to vector<16x128xi32>
    %99 = arith.cmpi eq, %10, %98 : vector<16x128xi32>
    %100 = arith.extui %99 : vector<16x128xi1> to vector<16x128xi32>
    %101 = arith.sitofp %100 : vector<16x128xi32> to vector<16x128xf32>
    %cst_37 = arith.constant dense<0.000000e+00> : vector<32x128xf32>
    %102 = tpu.matmul %9, %101, %cst_37 {dimension_numbers = #tpu.dot_dimension_numbers<[1], [0], [0], [1], [0, 0, 1, 1], [], []>} : vector<32x16xf32>, vector<16x128xf32>, vector<32x128xf32> -> vector<32x128xf32>
    %cst_38 = arith.constant 1.000000e+00 : f32
    %103 = vector.broadcast %cst_38 : f32 to vector<1x128xf32>
    %104 = vector.extract_strided_slice %7 {offsets = [0, 1, 0], sizes = [1, 1, 128], strides = [1, 1, 1]} : vector<3x8x128xf32> to vector<1x1x128xf32>
    %105 = vector.shape_cast %104 : vector<1x1x128xf32> to vector<1x128xf32>
    %106 = vector.extract_strided_slice %5 {offsets = [0, 1, 0], sizes = [1, 1, 128], strides = [1, 1, 1]} : vector<3x8x128xi32> to vector<1x1x128xi32>
    %107 = vector.shape_cast %106 : vector<1x1x128xi32> to vector<1x128xi32>
    %108 = vector.broadcast %107 : vector<1x128xi32> to vector<32x128xi32>
    %109 = arith.cmpi eq, %11, %108 : vector<32x128xi32>
    %cst_39 = arith.constant 0.000000e+00 : f32
    %110 = vector.broadcast %cst_39 : f32 to vector<32x128xf32>
    %111 = arith.select %109, %102, %110 : vector<32x128xi1>, vector<32x128xf32>
    %cst_40 = arith.constant dense<0.000000e+00> : vector<128xf32>
    %112 = vector.multi_reduction <add>, %111, %cst_40 [0] : vector<32x128xf32> to vector<128xf32>
    %113 = vector.shape_cast %112 : vector<128xf32> to vector<1x128xf32>
    %cst_41 = arith.constant 0.000000e+00 : f32
    %114 = vector.broadcast %cst_41 : f32 to vector<1x128xf32>
    %115 = arith.subf %114, %105 : vector<1x128xf32>
    %116 = arith.mulf %115, %113 : vector<1x128xf32>
    %117 = math.exp %116 : vector<1x128xf32>
    %cst_42 = arith.constant 1.000000e+00 : f32
    %118 = vector.broadcast %cst_42 : f32 to vector<1x128xf32>
    %119 = arith.addf %118, %117 : vector<1x128xf32>
    %120 = tpu.reciprocal %119 {approx = true} : vector<1x128xf32> -> vector<1x128xf32>
    %121 = arith.mulf %119, %120 : vector<1x128xf32>
    %cst_43 = arith.constant 2.000000e+00 : f32
    %122 = vector.broadcast %cst_43 : f32 to vector<1x128xf32>
    %123 = arith.subf %122, %121 : vector<1x128xf32>
    %124 = arith.mulf %120, %123 : vector<1x128xf32>
    %cst_44 = arith.constant 0.000000e+00 : f32
    %125 = vector.broadcast %cst_44 : f32 to vector<1x128xf32>
    %126 = arith.cmpf oeq, %105, %125 : vector<1x128xf32>
    %cst_45 = arith.constant 1.000000e+00 : f32
    %127 = vector.broadcast %cst_45 : f32 to vector<1x128xf32>
    %128 = arith.select %126, %127, %124 : vector<1x128xi1>, vector<1x128xf32>
    %129 = arith.mulf %103, %128 : vector<1x128xf32>
    %130 = vector.extract_strided_slice %7 {offsets = [1, 1, 0], sizes = [1, 1, 128], strides = [1, 1, 1]} : vector<3x8x128xf32> to vector<1x1x128xf32>
    %131 = vector.shape_cast %130 : vector<1x1x128xf32> to vector<1x128xf32>
    %132 = vector.extract_strided_slice %5 {offsets = [1, 1, 0], sizes = [1, 1, 128], strides = [1, 1, 1]} : vector<3x8x128xi32> to vector<1x1x128xi32>
    %133 = vector.shape_cast %132 : vector<1x1x128xi32> to vector<1x128xi32>
    %134 = vector.broadcast %133 : vector<1x128xi32> to vector<32x128xi32>
    %135 = arith.cmpi eq, %11, %134 : vector<32x128xi32>
    %cst_46 = arith.constant 0.000000e+00 : f32
    %136 = vector.broadcast %cst_46 : f32 to vector<32x128xf32>
    %137 = arith.select %135, %102, %136 : vector<32x128xi1>, vector<32x128xf32>
    %cst_47 = arith.constant dense<0.000000e+00> : vector<128xf32>
    %138 = vector.multi_reduction <add>, %137, %cst_47 [0] : vector<32x128xf32> to vector<128xf32>
    %139 = vector.shape_cast %138 : vector<128xf32> to vector<1x128xf32>
    %cst_48 = arith.constant 0.000000e+00 : f32
    %140 = vector.broadcast %cst_48 : f32 to vector<1x128xf32>
    %141 = arith.subf %140, %131 : vector<1x128xf32>
    %142 = arith.mulf %141, %139 : vector<1x128xf32>
    %143 = math.exp %142 : vector<1x128xf32>
    %cst_49 = arith.constant 1.000000e+00 : f32
    %144 = vector.broadcast %cst_49 : f32 to vector<1x128xf32>
    %145 = arith.addf %144, %143 : vector<1x128xf32>
    %146 = tpu.reciprocal %145 {approx = true} : vector<1x128xf32> -> vector<1x128xf32>
    %147 = arith.mulf %145, %146 : vector<1x128xf32>
    %cst_50 = arith.constant 2.000000e+00 : f32
    %148 = vector.broadcast %cst_50 : f32 to vector<1x128xf32>
    %149 = arith.subf %148, %147 : vector<1x128xf32>
    %150 = arith.mulf %146, %149 : vector<1x128xf32>
    %cst_51 = arith.constant 0.000000e+00 : f32
    %151 = vector.broadcast %cst_51 : f32 to vector<1x128xf32>
    %152 = arith.cmpf oeq, %131, %151 : vector<1x128xf32>
    %cst_52 = arith.constant 1.000000e+00 : f32
    %153 = vector.broadcast %cst_52 : f32 to vector<1x128xf32>
    %154 = arith.select %152, %153, %150 : vector<1x128xi1>, vector<1x128xf32>
    %155 = arith.mulf %129, %154 : vector<1x128xf32>
    %156 = vector.extract_strided_slice %7 {offsets = [2, 1, 0], sizes = [1, 1, 128], strides = [1, 1, 1]} : vector<3x8x128xf32> to vector<1x1x128xf32>
    %157 = vector.shape_cast %156 : vector<1x1x128xf32> to vector<1x128xf32>
    %158 = vector.extract_strided_slice %5 {offsets = [2, 1, 0], sizes = [1, 1, 128], strides = [1, 1, 1]} : vector<3x8x128xi32> to vector<1x1x128xi32>
    %159 = vector.shape_cast %158 : vector<1x1x128xi32> to vector<1x128xi32>
    %160 = vector.broadcast %159 : vector<1x128xi32> to vector<32x128xi32>
    %161 = arith.cmpi eq, %11, %160 : vector<32x128xi32>
    %cst_53 = arith.constant 0.000000e+00 : f32
    %162 = vector.broadcast %cst_53 : f32 to vector<32x128xf32>
    %163 = arith.select %161, %102, %162 : vector<32x128xi1>, vector<32x128xf32>
    %cst_54 = arith.constant dense<0.000000e+00> : vector<128xf32>
    %164 = vector.multi_reduction <add>, %163, %cst_54 [0] : vector<32x128xf32> to vector<128xf32>
    %165 = vector.shape_cast %164 : vector<128xf32> to vector<1x128xf32>
    %cst_55 = arith.constant 0.000000e+00 : f32
    %166 = vector.broadcast %cst_55 : f32 to vector<1x128xf32>
    %167 = arith.subf %166, %157 : vector<1x128xf32>
    %168 = arith.mulf %167, %165 : vector<1x128xf32>
    %169 = math.exp %168 : vector<1x128xf32>
    %cst_56 = arith.constant 1.000000e+00 : f32
    %170 = vector.broadcast %cst_56 : f32 to vector<1x128xf32>
    %171 = arith.addf %170, %169 : vector<1x128xf32>
    %172 = tpu.reciprocal %171 {approx = true} : vector<1x128xf32> -> vector<1x128xf32>
    %173 = arith.mulf %171, %172 : vector<1x128xf32>
    %cst_57 = arith.constant 2.000000e+00 : f32
    %174 = vector.broadcast %cst_57 : f32 to vector<1x128xf32>
    %175 = arith.subf %174, %173 : vector<1x128xf32>
    %176 = arith.mulf %172, %175 : vector<1x128xf32>
    %cst_58 = arith.constant 0.000000e+00 : f32
    %177 = vector.broadcast %cst_58 : f32 to vector<1x128xf32>
    %178 = arith.cmpf oeq, %157, %177 : vector<1x128xf32>
    %cst_59 = arith.constant 1.000000e+00 : f32
    %179 = vector.broadcast %cst_59 : f32 to vector<1x128xf32>
    %180 = arith.select %178, %179, %176 : vector<1x128xi1>, vector<1x128xf32>
    %181 = arith.mulf %155, %180 : vector<1x128xf32>
    %182 = vector.extract_strided_slice %3 {offsets = [2, 0], sizes = [1, 128], strides = [1, 1]} : vector<8x128xi32> to vector<1x128xi32>
    %183 = vector.broadcast %182 : vector<1x128xi32> to vector<16x128xi32>
    %184 = arith.cmpi eq, %10, %183 : vector<16x128xi32>
    %185 = arith.extui %184 : vector<16x128xi1> to vector<16x128xi32>
    %186 = arith.sitofp %185 : vector<16x128xi32> to vector<16x128xf32>
    %cst_60 = arith.constant dense<0.000000e+00> : vector<32x128xf32>
    %187 = tpu.matmul %9, %186, %cst_60 {dimension_numbers = #tpu.dot_dimension_numbers<[1], [0], [0], [1], [0, 0, 1, 1], [], []>} : vector<32x16xf32>, vector<16x128xf32>, vector<32x128xf32> -> vector<32x128xf32>
    %cst_61 = arith.constant 1.000000e+00 : f32
    %188 = vector.broadcast %cst_61 : f32 to vector<1x128xf32>
    %189 = vector.extract_strided_slice %7 {offsets = [0, 2, 0], sizes = [1, 1, 128], strides = [1, 1, 1]} : vector<3x8x128xf32> to vector<1x1x128xf32>
    %190 = vector.shape_cast %189 : vector<1x1x128xf32> to vector<1x128xf32>
    %191 = vector.extract_strided_slice %5 {offsets = [0, 2, 0], sizes = [1, 1, 128], strides = [1, 1, 1]} : vector<3x8x128xi32> to vector<1x1x128xi32>
    %192 = vector.shape_cast %191 : vector<1x1x128xi32> to vector<1x128xi32>
    %193 = vector.broadcast %192 : vector<1x128xi32> to vector<32x128xi32>
    %194 = arith.cmpi eq, %11, %193 : vector<32x128xi32>
    %cst_62 = arith.constant 0.000000e+00 : f32
    %195 = vector.broadcast %cst_62 : f32 to vector<32x128xf32>
    %196 = arith.select %194, %187, %195 : vector<32x128xi1>, vector<32x128xf32>
    %cst_63 = arith.constant dense<0.000000e+00> : vector<128xf32>
    %197 = vector.multi_reduction <add>, %196, %cst_63 [0] : vector<32x128xf32> to vector<128xf32>
    %198 = vector.shape_cast %197 : vector<128xf32> to vector<1x128xf32>
    %cst_64 = arith.constant 0.000000e+00 : f32
    %199 = vector.broadcast %cst_64 : f32 to vector<1x128xf32>
    %200 = arith.subf %199, %190 : vector<1x128xf32>
    %201 = arith.mulf %200, %198 : vector<1x128xf32>
    %202 = math.exp %201 : vector<1x128xf32>
    %cst_65 = arith.constant 1.000000e+00 : f32
    %203 = vector.broadcast %cst_65 : f32 to vector<1x128xf32>
    %204 = arith.addf %203, %202 : vector<1x128xf32>
    %205 = tpu.reciprocal %204 {approx = true} : vector<1x128xf32> -> vector<1x128xf32>
    %206 = arith.mulf %204, %205 : vector<1x128xf32>
    %cst_66 = arith.constant 2.000000e+00 : f32
    %207 = vector.broadcast %cst_66 : f32 to vector<1x128xf32>
    %208 = arith.subf %207, %206 : vector<1x128xf32>
    %209 = arith.mulf %205, %208 : vector<1x128xf32>
    %cst_67 = arith.constant 0.000000e+00 : f32
    %210 = vector.broadcast %cst_67 : f32 to vector<1x128xf32>
    %211 = arith.cmpf oeq, %190, %210 : vector<1x128xf32>
    %cst_68 = arith.constant 1.000000e+00 : f32
    %212 = vector.broadcast %cst_68 : f32 to vector<1x128xf32>
    %213 = arith.select %211, %212, %209 : vector<1x128xi1>, vector<1x128xf32>
    %214 = arith.mulf %188, %213 : vector<1x128xf32>
    %215 = vector.extract_strided_slice %7 {offsets = [1, 2, 0], sizes = [1, 1, 128], strides = [1, 1, 1]} : vector<3x8x128xf32> to vector<1x1x128xf32>
    %216 = vector.shape_cast %215 : vector<1x1x128xf32> to vector<1x128xf32>
    %217 = vector.extract_strided_slice %5 {offsets = [1, 2, 0], sizes = [1, 1, 128], strides = [1, 1, 1]} : vector<3x8x128xi32> to vector<1x1x128xi32>
    %218 = vector.shape_cast %217 : vector<1x1x128xi32> to vector<1x128xi32>
    %219 = vector.broadcast %218 : vector<1x128xi32> to vector<32x128xi32>
    %220 = arith.cmpi eq, %11, %219 : vector<32x128xi32>
    %cst_69 = arith.constant 0.000000e+00 : f32
    %221 = vector.broadcast %cst_69 : f32 to vector<32x128xf32>
    %222 = arith.select %220, %187, %221 : vector<32x128xi1>, vector<32x128xf32>
    %cst_70 = arith.constant dense<0.000000e+00> : vector<128xf32>
    %223 = vector.multi_reduction <add>, %222, %cst_70 [0] : vector<32x128xf32> to vector<128xf32>
    %224 = vector.shape_cast %223 : vector<128xf32> to vector<1x128xf32>
    %cst_71 = arith.constant 0.000000e+00 : f32
    %225 = vector.broadcast %cst_71 : f32 to vector<1x128xf32>
    %226 = arith.subf %225, %216 : vector<1x128xf32>
    %227 = arith.mulf %226, %224 : vector<1x128xf32>
    %228 = math.exp %227 : vector<1x128xf32>
    %cst_72 = arith.constant 1.000000e+00 : f32
    %229 = vector.broadcast %cst_72 : f32 to vector<1x128xf32>
    %230 = arith.addf %229, %228 : vector<1x128xf32>
    %231 = tpu.reciprocal %230 {approx = true} : vector<1x128xf32> -> vector<1x128xf32>
    %232 = arith.mulf %230, %231 : vector<1x128xf32>
    %cst_73 = arith.constant 2.000000e+00 : f32
    %233 = vector.broadcast %cst_73 : f32 to vector<1x128xf32>
    %234 = arith.subf %233, %232 : vector<1x128xf32>
    %235 = arith.mulf %231, %234 : vector<1x128xf32>
    %cst_74 = arith.constant 0.000000e+00 : f32
    %236 = vector.broadcast %cst_74 : f32 to vector<1x128xf32>
    %237 = arith.cmpf oeq, %216, %236 : vector<1x128xf32>
    %cst_75 = arith.constant 1.000000e+00 : f32
    %238 = vector.broadcast %cst_75 : f32 to vector<1x128xf32>
    %239 = arith.select %237, %238, %235 : vector<1x128xi1>, vector<1x128xf32>
    %240 = arith.mulf %214, %239 : vector<1x128xf32>
    %241 = vector.extract_strided_slice %7 {offsets = [2, 2, 0], sizes = [1, 1, 128], strides = [1, 1, 1]} : vector<3x8x128xf32> to vector<1x1x128xf32>
    %242 = vector.shape_cast %241 : vector<1x1x128xf32> to vector<1x128xf32>
    %243 = vector.extract_strided_slice %5 {offsets = [2, 2, 0], sizes = [1, 1, 128], strides = [1, 1, 1]} : vector<3x8x128xi32> to vector<1x1x128xi32>
    %244 = vector.shape_cast %243 : vector<1x1x128xi32> to vector<1x128xi32>
    %245 = vector.broadcast %244 : vector<1x128xi32> to vector<32x128xi32>
    %246 = arith.cmpi eq, %11, %245 : vector<32x128xi32>
    %cst_76 = arith.constant 0.000000e+00 : f32
    %247 = vector.broadcast %cst_76 : f32 to vector<32x128xf32>
    %248 = arith.select %246, %187, %247 : vector<32x128xi1>, vector<32x128xf32>
    %cst_77 = arith.constant dense<0.000000e+00> : vector<128xf32>
    %249 = vector.multi_reduction <add>, %248, %cst_77 [0] : vector<32x128xf32> to vector<128xf32>
    %250 = vector.shape_cast %249 : vector<128xf32> to vector<1x128xf32>
    %cst_78 = arith.constant 0.000000e+00 : f32
    %251 = vector.broadcast %cst_78 : f32 to vector<1x128xf32>
    %252 = arith.subf %251, %242 : vector<1x128xf32>
    %253 = arith.mulf %252, %250 : vector<1x128xf32>
    %254 = math.exp %253 : vector<1x128xf32>
    %cst_79 = arith.constant 1.000000e+00 : f32
    %255 = vector.broadcast %cst_79 : f32 to vector<1x128xf32>
    %256 = arith.addf %255, %254 : vector<1x128xf32>
    %257 = tpu.reciprocal %256 {approx = true} : vector<1x128xf32> -> vector<1x128xf32>
    %258 = arith.mulf %256, %257 : vector<1x128xf32>
    %cst_80 = arith.constant 2.000000e+00 : f32
    %259 = vector.broadcast %cst_80 : f32 to vector<1x128xf32>
    %260 = arith.subf %259, %258 : vector<1x128xf32>
    %261 = arith.mulf %257, %260 : vector<1x128xf32>
    %cst_81 = arith.constant 0.000000e+00 : f32
    %262 = vector.broadcast %cst_81 : f32 to vector<1x128xf32>
    %263 = arith.cmpf oeq, %242, %262 : vector<1x128xf32>
    %cst_82 = arith.constant 1.000000e+00 : f32
    %264 = vector.broadcast %cst_82 : f32 to vector<1x128xf32>
    %265 = arith.select %263, %264, %261 : vector<1x128xi1>, vector<1x128xf32>
    %266 = arith.mulf %240, %265 : vector<1x128xf32>
    %267 = vector.extract_strided_slice %3 {offsets = [3, 0], sizes = [1, 128], strides = [1, 1]} : vector<8x128xi32> to vector<1x128xi32>
    %268 = vector.broadcast %267 : vector<1x128xi32> to vector<16x128xi32>
    %269 = arith.cmpi eq, %10, %268 : vector<16x128xi32>
    %270 = arith.extui %269 : vector<16x128xi1> to vector<16x128xi32>
    %271 = arith.sitofp %270 : vector<16x128xi32> to vector<16x128xf32>
    %cst_83 = arith.constant dense<0.000000e+00> : vector<32x128xf32>
    %272 = tpu.matmul %9, %271, %cst_83 {dimension_numbers = #tpu.dot_dimension_numbers<[1], [0], [0], [1], [0, 0, 1, 1], [], []>} : vector<32x16xf32>, vector<16x128xf32>, vector<32x128xf32> -> vector<32x128xf32>
    %cst_84 = arith.constant 1.000000e+00 : f32
    %273 = vector.broadcast %cst_84 : f32 to vector<1x128xf32>
    %274 = vector.extract_strided_slice %7 {offsets = [0, 3, 0], sizes = [1, 1, 128], strides = [1, 1, 1]} : vector<3x8x128xf32> to vector<1x1x128xf32>
    %275 = vector.shape_cast %274 : vector<1x1x128xf32> to vector<1x128xf32>
    %276 = vector.extract_strided_slice %5 {offsets = [0, 3, 0], sizes = [1, 1, 128], strides = [1, 1, 1]} : vector<3x8x128xi32> to vector<1x1x128xi32>
    %277 = vector.shape_cast %276 : vector<1x1x128xi32> to vector<1x128xi32>
    %278 = vector.broadcast %277 : vector<1x128xi32> to vector<32x128xi32>
    %279 = arith.cmpi eq, %11, %278 : vector<32x128xi32>
    %cst_85 = arith.constant 0.000000e+00 : f32
    %280 = vector.broadcast %cst_85 : f32 to vector<32x128xf32>
    %281 = arith.select %279, %272, %280 : vector<32x128xi1>, vector<32x128xf32>
    %cst_86 = arith.constant dense<0.000000e+00> : vector<128xf32>
    %282 = vector.multi_reduction <add>, %281, %cst_86 [0] : vector<32x128xf32> to vector<128xf32>
    %283 = vector.shape_cast %282 : vector<128xf32> to vector<1x128xf32>
    %cst_87 = arith.constant 0.000000e+00 : f32
    %284 = vector.broadcast %cst_87 : f32 to vector<1x128xf32>
    %285 = arith.subf %284, %275 : vector<1x128xf32>
    %286 = arith.mulf %285, %283 : vector<1x128xf32>
    %287 = math.exp %286 : vector<1x128xf32>
    %cst_88 = arith.constant 1.000000e+00 : f32
    %288 = vector.broadcast %cst_88 : f32 to vector<1x128xf32>
    %289 = arith.addf %288, %287 : vector<1x128xf32>
    %290 = tpu.reciprocal %289 {approx = true} : vector<1x128xf32> -> vector<1x128xf32>
    %291 = arith.mulf %289, %290 : vector<1x128xf32>
    %cst_89 = arith.constant 2.000000e+00 : f32
    %292 = vector.broadcast %cst_89 : f32 to vector<1x128xf32>
    %293 = arith.subf %292, %291 : vector<1x128xf32>
    %294 = arith.mulf %290, %293 : vector<1x128xf32>
    %cst_90 = arith.constant 0.000000e+00 : f32
    %295 = vector.broadcast %cst_90 : f32 to vector<1x128xf32>
    %296 = arith.cmpf oeq, %275, %295 : vector<1x128xf32>
    %cst_91 = arith.constant 1.000000e+00 : f32
    %297 = vector.broadcast %cst_91 : f32 to vector<1x128xf32>
    %298 = arith.select %296, %297, %294 : vector<1x128xi1>, vector<1x128xf32>
    %299 = arith.mulf %273, %298 : vector<1x128xf32>
    %300 = vector.extract_strided_slice %7 {offsets = [1, 3, 0], sizes = [1, 1, 128], strides = [1, 1, 1]} : vector<3x8x128xf32> to vector<1x1x128xf32>
    %301 = vector.shape_cast %300 : vector<1x1x128xf32> to vector<1x128xf32>
    %302 = vector.extract_strided_slice %5 {offsets = [1, 3, 0], sizes = [1, 1, 128], strides = [1, 1, 1]} : vector<3x8x128xi32> to vector<1x1x128xi32>
    %303 = vector.shape_cast %302 : vector<1x1x128xi32> to vector<1x128xi32>
    %304 = vector.broadcast %303 : vector<1x128xi32> to vector<32x128xi32>
    %305 = arith.cmpi eq, %11, %304 : vector<32x128xi32>
    %cst_92 = arith.constant 0.000000e+00 : f32
    %306 = vector.broadcast %cst_92 : f32 to vector<32x128xf32>
    %307 = arith.select %305, %272, %306 : vector<32x128xi1>, vector<32x128xf32>
    %cst_93 = arith.constant dense<0.000000e+00> : vector<128xf32>
    %308 = vector.multi_reduction <add>, %307, %cst_93 [0] : vector<32x128xf32> to vector<128xf32>
    %309 = vector.shape_cast %308 : vector<128xf32> to vector<1x128xf32>
    %cst_94 = arith.constant 0.000000e+00 : f32
    %310 = vector.broadcast %cst_94 : f32 to vector<1x128xf32>
    %311 = arith.subf %310, %301 : vector<1x128xf32>
    %312 = arith.mulf %311, %309 : vector<1x128xf32>
    %313 = math.exp %312 : vector<1x128xf32>
    %cst_95 = arith.constant 1.000000e+00 : f32
    %314 = vector.broadcast %cst_95 : f32 to vector<1x128xf32>
    %315 = arith.addf %314, %313 : vector<1x128xf32>
    %316 = tpu.reciprocal %315 {approx = true} : vector<1x128xf32> -> vector<1x128xf32>
    %317 = arith.mulf %315, %316 : vector<1x128xf32>
    %cst_96 = arith.constant 2.000000e+00 : f32
    %318 = vector.broadcast %cst_96 : f32 to vector<1x128xf32>
    %319 = arith.subf %318, %317 : vector<1x128xf32>
    %320 = arith.mulf %316, %319 : vector<1x128xf32>
    %cst_97 = arith.constant 0.000000e+00 : f32
    %321 = vector.broadcast %cst_97 : f32 to vector<1x128xf32>
    %322 = arith.cmpf oeq, %301, %321 : vector<1x128xf32>
    %cst_98 = arith.constant 1.000000e+00 : f32
    %323 = vector.broadcast %cst_98 : f32 to vector<1x128xf32>
    %324 = arith.select %322, %323, %320 : vector<1x128xi1>, vector<1x128xf32>
    %325 = arith.mulf %299, %324 : vector<1x128xf32>
    %326 = vector.extract_strided_slice %7 {offsets = [2, 3, 0], sizes = [1, 1, 128], strides = [1, 1, 1]} : vector<3x8x128xf32> to vector<1x1x128xf32>
    %327 = vector.shape_cast %326 : vector<1x1x128xf32> to vector<1x128xf32>
    %328 = vector.extract_strided_slice %5 {offsets = [2, 3, 0], sizes = [1, 1, 128], strides = [1, 1, 1]} : vector<3x8x128xi32> to vector<1x1x128xi32>
    %329 = vector.shape_cast %328 : vector<1x1x128xi32> to vector<1x128xi32>
    %330 = vector.broadcast %329 : vector<1x128xi32> to vector<32x128xi32>
    %331 = arith.cmpi eq, %11, %330 : vector<32x128xi32>
    %cst_99 = arith.constant 0.000000e+00 : f32
    %332 = vector.broadcast %cst_99 : f32 to vector<32x128xf32>
    %333 = arith.select %331, %272, %332 : vector<32x128xi1>, vector<32x128xf32>
    %cst_100 = arith.constant dense<0.000000e+00> : vector<128xf32>
    %334 = vector.multi_reduction <add>, %333, %cst_100 [0] : vector<32x128xf32> to vector<128xf32>
    %335 = vector.shape_cast %334 : vector<128xf32> to vector<1x128xf32>
    %cst_101 = arith.constant 0.000000e+00 : f32
    %336 = vector.broadcast %cst_101 : f32 to vector<1x128xf32>
    %337 = arith.subf %336, %327 : vector<1x128xf32>
    %338 = arith.mulf %337, %335 : vector<1x128xf32>
    %339 = math.exp %338 : vector<1x128xf32>
    %cst_102 = arith.constant 1.000000e+00 : f32
    %340 = vector.broadcast %cst_102 : f32 to vector<1x128xf32>
    %341 = arith.addf %340, %339 : vector<1x128xf32>
    %342 = tpu.reciprocal %341 {approx = true} : vector<1x128xf32> -> vector<1x128xf32>
    %343 = arith.mulf %341, %342 : vector<1x128xf32>
    %cst_103 = arith.constant 2.000000e+00 : f32
    %344 = vector.broadcast %cst_103 : f32 to vector<1x128xf32>
    %345 = arith.subf %344, %343 : vector<1x128xf32>
    %346 = arith.mulf %342, %345 : vector<1x128xf32>
    %cst_104 = arith.constant 0.000000e+00 : f32
    %347 = vector.broadcast %cst_104 : f32 to vector<1x128xf32>
    %348 = arith.cmpf oeq, %327, %347 : vector<1x128xf32>
    %cst_105 = arith.constant 1.000000e+00 : f32
    %349 = vector.broadcast %cst_105 : f32 to vector<1x128xf32>
    %350 = arith.select %348, %349, %346 : vector<1x128xi1>, vector<1x128xf32>
    %351 = arith.mulf %325, %350 : vector<1x128xf32>
    %352 = vector.extract_strided_slice %3 {offsets = [4, 0], sizes = [1, 128], strides = [1, 1]} : vector<8x128xi32> to vector<1x128xi32>
    %353 = vector.broadcast %352 : vector<1x128xi32> to vector<16x128xi32>
    %354 = arith.cmpi eq, %10, %353 : vector<16x128xi32>
    %355 = arith.extui %354 : vector<16x128xi1> to vector<16x128xi32>
    %356 = arith.sitofp %355 : vector<16x128xi32> to vector<16x128xf32>
    %cst_106 = arith.constant dense<0.000000e+00> : vector<32x128xf32>
    %357 = tpu.matmul %9, %356, %cst_106 {dimension_numbers = #tpu.dot_dimension_numbers<[1], [0], [0], [1], [0, 0, 1, 1], [], []>} : vector<32x16xf32>, vector<16x128xf32>, vector<32x128xf32> -> vector<32x128xf32>
    %cst_107 = arith.constant 1.000000e+00 : f32
    %358 = vector.broadcast %cst_107 : f32 to vector<1x128xf32>
    %359 = vector.extract_strided_slice %7 {offsets = [0, 4, 0], sizes = [1, 1, 128], strides = [1, 1, 1]} : vector<3x8x128xf32> to vector<1x1x128xf32>
    %360 = vector.shape_cast %359 : vector<1x1x128xf32> to vector<1x128xf32>
    %361 = vector.extract_strided_slice %5 {offsets = [0, 4, 0], sizes = [1, 1, 128], strides = [1, 1, 1]} : vector<3x8x128xi32> to vector<1x1x128xi32>
    %362 = vector.shape_cast %361 : vector<1x1x128xi32> to vector<1x128xi32>
    %363 = vector.broadcast %362 : vector<1x128xi32> to vector<32x128xi32>
    %364 = arith.cmpi eq, %11, %363 : vector<32x128xi32>
    %cst_108 = arith.constant 0.000000e+00 : f32
    %365 = vector.broadcast %cst_108 : f32 to vector<32x128xf32>
    %366 = arith.select %364, %357, %365 : vector<32x128xi1>, vector<32x128xf32>
    %cst_109 = arith.constant dense<0.000000e+00> : vector<128xf32>
    %367 = vector.multi_reduction <add>, %366, %cst_109 [0] : vector<32x128xf32> to vector<128xf32>
    %368 = vector.shape_cast %367 : vector<128xf32> to vector<1x128xf32>
    %cst_110 = arith.constant 0.000000e+00 : f32
    %369 = vector.broadcast %cst_110 : f32 to vector<1x128xf32>
    %370 = arith.subf %369, %360 : vector<1x128xf32>
    %371 = arith.mulf %370, %368 : vector<1x128xf32>
    %372 = math.exp %371 : vector<1x128xf32>
    %cst_111 = arith.constant 1.000000e+00 : f32
    %373 = vector.broadcast %cst_111 : f32 to vector<1x128xf32>
    %374 = arith.addf %373, %372 : vector<1x128xf32>
    %375 = tpu.reciprocal %374 {approx = true} : vector<1x128xf32> -> vector<1x128xf32>
    %376 = arith.mulf %374, %375 : vector<1x128xf32>
    %cst_112 = arith.constant 2.000000e+00 : f32
    %377 = vector.broadcast %cst_112 : f32 to vector<1x128xf32>
    %378 = arith.subf %377, %376 : vector<1x128xf32>
    %379 = arith.mulf %375, %378 : vector<1x128xf32>
    %cst_113 = arith.constant 0.000000e+00 : f32
    %380 = vector.broadcast %cst_113 : f32 to vector<1x128xf32>
    %381 = arith.cmpf oeq, %360, %380 : vector<1x128xf32>
    %cst_114 = arith.constant 1.000000e+00 : f32
    %382 = vector.broadcast %cst_114 : f32 to vector<1x128xf32>
    %383 = arith.select %381, %382, %379 : vector<1x128xi1>, vector<1x128xf32>
    %384 = arith.mulf %358, %383 : vector<1x128xf32>
    %385 = vector.extract_strided_slice %7 {offsets = [1, 4, 0], sizes = [1, 1, 128], strides = [1, 1, 1]} : vector<3x8x128xf32> to vector<1x1x128xf32>
    %386 = vector.shape_cast %385 : vector<1x1x128xf32> to vector<1x128xf32>
    %387 = vector.extract_strided_slice %5 {offsets = [1, 4, 0], sizes = [1, 1, 128], strides = [1, 1, 1]} : vector<3x8x128xi32> to vector<1x1x128xi32>
    %388 = vector.shape_cast %387 : vector<1x1x128xi32> to vector<1x128xi32>
    %389 = vector.broadcast %388 : vector<1x128xi32> to vector<32x128xi32>
    %390 = arith.cmpi eq, %11, %389 : vector<32x128xi32>
    %cst_115 = arith.constant 0.000000e+00 : f32
    %391 = vector.broadcast %cst_115 : f32 to vector<32x128xf32>
    %392 = arith.select %390, %357, %391 : vector<32x128xi1>, vector<32x128xf32>
    %cst_116 = arith.constant dense<0.000000e+00> : vector<128xf32>
    %393 = vector.multi_reduction <add>, %392, %cst_116 [0] : vector<32x128xf32> to vector<128xf32>
    %394 = vector.shape_cast %393 : vector<128xf32> to vector<1x128xf32>
    %cst_117 = arith.constant 0.000000e+00 : f32
    %395 = vector.broadcast %cst_117 : f32 to vector<1x128xf32>
    %396 = arith.subf %395, %386 : vector<1x128xf32>
    %397 = arith.mulf %396, %394 : vector<1x128xf32>
    %398 = math.exp %397 : vector<1x128xf32>
    %cst_118 = arith.constant 1.000000e+00 : f32
    %399 = vector.broadcast %cst_118 : f32 to vector<1x128xf32>
    %400 = arith.addf %399, %398 : vector<1x128xf32>
    %401 = tpu.reciprocal %400 {approx = true} : vector<1x128xf32> -> vector<1x128xf32>
    %402 = arith.mulf %400, %401 : vector<1x128xf32>
    %cst_119 = arith.constant 2.000000e+00 : f32
    %403 = vector.broadcast %cst_119 : f32 to vector<1x128xf32>
    %404 = arith.subf %403, %402 : vector<1x128xf32>
    %405 = arith.mulf %401, %404 : vector<1x128xf32>
    %cst_120 = arith.constant 0.000000e+00 : f32
    %406 = vector.broadcast %cst_120 : f32 to vector<1x128xf32>
    %407 = arith.cmpf oeq, %386, %406 : vector<1x128xf32>
    %cst_121 = arith.constant 1.000000e+00 : f32
    %408 = vector.broadcast %cst_121 : f32 to vector<1x128xf32>
    %409 = arith.select %407, %408, %405 : vector<1x128xi1>, vector<1x128xf32>
    %410 = arith.mulf %384, %409 : vector<1x128xf32>
    %411 = vector.extract_strided_slice %7 {offsets = [2, 4, 0], sizes = [1, 1, 128], strides = [1, 1, 1]} : vector<3x8x128xf32> to vector<1x1x128xf32>
    %412 = vector.shape_cast %411 : vector<1x1x128xf32> to vector<1x128xf32>
    %413 = vector.extract_strided_slice %5 {offsets = [2, 4, 0], sizes = [1, 1, 128], strides = [1, 1, 1]} : vector<3x8x128xi32> to vector<1x1x128xi32>
    %414 = vector.shape_cast %413 : vector<1x1x128xi32> to vector<1x128xi32>
    %415 = vector.broadcast %414 : vector<1x128xi32> to vector<32x128xi32>
    %416 = arith.cmpi eq, %11, %415 : vector<32x128xi32>
    %cst_122 = arith.constant 0.000000e+00 : f32
    %417 = vector.broadcast %cst_122 : f32 to vector<32x128xf32>
    %418 = arith.select %416, %357, %417 : vector<32x128xi1>, vector<32x128xf32>
    %cst_123 = arith.constant dense<0.000000e+00> : vector<128xf32>
    %419 = vector.multi_reduction <add>, %418, %cst_123 [0] : vector<32x128xf32> to vector<128xf32>
    %420 = vector.shape_cast %419 : vector<128xf32> to vector<1x128xf32>
    %cst_124 = arith.constant 0.000000e+00 : f32
    %421 = vector.broadcast %cst_124 : f32 to vector<1x128xf32>
    %422 = arith.subf %421, %412 : vector<1x128xf32>
    %423 = arith.mulf %422, %420 : vector<1x128xf32>
    %424 = math.exp %423 : vector<1x128xf32>
    %cst_125 = arith.constant 1.000000e+00 : f32
    %425 = vector.broadcast %cst_125 : f32 to vector<1x128xf32>
    %426 = arith.addf %425, %424 : vector<1x128xf32>
    %427 = tpu.reciprocal %426 {approx = true} : vector<1x128xf32> -> vector<1x128xf32>
    %428 = arith.mulf %426, %427 : vector<1x128xf32>
    %cst_126 = arith.constant 2.000000e+00 : f32
    %429 = vector.broadcast %cst_126 : f32 to vector<1x128xf32>
    %430 = arith.subf %429, %428 : vector<1x128xf32>
    %431 = arith.mulf %427, %430 : vector<1x128xf32>
    %cst_127 = arith.constant 0.000000e+00 : f32
    %432 = vector.broadcast %cst_127 : f32 to vector<1x128xf32>
    %433 = arith.cmpf oeq, %412, %432 : vector<1x128xf32>
    %cst_128 = arith.constant 1.000000e+00 : f32
    %434 = vector.broadcast %cst_128 : f32 to vector<1x128xf32>
    %435 = arith.select %433, %434, %431 : vector<1x128xi1>, vector<1x128xf32>
    %436 = arith.mulf %410, %435 : vector<1x128xf32>
    %437 = vector.extract_strided_slice %3 {offsets = [5, 0], sizes = [1, 128], strides = [1, 1]} : vector<8x128xi32> to vector<1x128xi32>
    %438 = vector.broadcast %437 : vector<1x128xi32> to vector<16x128xi32>
    %439 = arith.cmpi eq, %10, %438 : vector<16x128xi32>
    %440 = arith.extui %439 : vector<16x128xi1> to vector<16x128xi32>
    %441 = arith.sitofp %440 : vector<16x128xi32> to vector<16x128xf32>
    %cst_129 = arith.constant dense<0.000000e+00> : vector<32x128xf32>
    %442 = tpu.matmul %9, %441, %cst_129 {dimension_numbers = #tpu.dot_dimension_numbers<[1], [0], [0], [1], [0, 0, 1, 1], [], []>} : vector<32x16xf32>, vector<16x128xf32>, vector<32x128xf32> -> vector<32x128xf32>
    %cst_130 = arith.constant 1.000000e+00 : f32
    %443 = vector.broadcast %cst_130 : f32 to vector<1x128xf32>
    %444 = vector.extract_strided_slice %7 {offsets = [0, 5, 0], sizes = [1, 1, 128], strides = [1, 1, 1]} : vector<3x8x128xf32> to vector<1x1x128xf32>
    %445 = vector.shape_cast %444 : vector<1x1x128xf32> to vector<1x128xf32>
    %446 = vector.extract_strided_slice %5 {offsets = [0, 5, 0], sizes = [1, 1, 128], strides = [1, 1, 1]} : vector<3x8x128xi32> to vector<1x1x128xi32>
    %447 = vector.shape_cast %446 : vector<1x1x128xi32> to vector<1x128xi32>
    %448 = vector.broadcast %447 : vector<1x128xi32> to vector<32x128xi32>
    %449 = arith.cmpi eq, %11, %448 : vector<32x128xi32>
    %cst_131 = arith.constant 0.000000e+00 : f32
    %450 = vector.broadcast %cst_131 : f32 to vector<32x128xf32>
    %451 = arith.select %449, %442, %450 : vector<32x128xi1>, vector<32x128xf32>
    %cst_132 = arith.constant dense<0.000000e+00> : vector<128xf32>
    %452 = vector.multi_reduction <add>, %451, %cst_132 [0] : vector<32x128xf32> to vector<128xf32>
    %453 = vector.shape_cast %452 : vector<128xf32> to vector<1x128xf32>
    %cst_133 = arith.constant 0.000000e+00 : f32
    %454 = vector.broadcast %cst_133 : f32 to vector<1x128xf32>
    %455 = arith.subf %454, %445 : vector<1x128xf32>
    %456 = arith.mulf %455, %453 : vector<1x128xf32>
    %457 = math.exp %456 : vector<1x128xf32>
    %cst_134 = arith.constant 1.000000e+00 : f32
    %458 = vector.broadcast %cst_134 : f32 to vector<1x128xf32>
    %459 = arith.addf %458, %457 : vector<1x128xf32>
    %460 = tpu.reciprocal %459 {approx = true} : vector<1x128xf32> -> vector<1x128xf32>
    %461 = arith.mulf %459, %460 : vector<1x128xf32>
    %cst_135 = arith.constant 2.000000e+00 : f32
    %462 = vector.broadcast %cst_135 : f32 to vector<1x128xf32>
    %463 = arith.subf %462, %461 : vector<1x128xf32>
    %464 = arith.mulf %460, %463 : vector<1x128xf32>
    %cst_136 = arith.constant 0.000000e+00 : f32
    %465 = vector.broadcast %cst_136 : f32 to vector<1x128xf32>
    %466 = arith.cmpf oeq, %445, %465 : vector<1x128xf32>
    %cst_137 = arith.constant 1.000000e+00 : f32
    %467 = vector.broadcast %cst_137 : f32 to vector<1x128xf32>
    %468 = arith.select %466, %467, %464 : vector<1x128xi1>, vector<1x128xf32>
    %469 = arith.mulf %443, %468 : vector<1x128xf32>
    %470 = vector.extract_strided_slice %7 {offsets = [1, 5, 0], sizes = [1, 1, 128], strides = [1, 1, 1]} : vector<3x8x128xf32> to vector<1x1x128xf32>
    %471 = vector.shape_cast %470 : vector<1x1x128xf32> to vector<1x128xf32>
    %472 = vector.extract_strided_slice %5 {offsets = [1, 5, 0], sizes = [1, 1, 128], strides = [1, 1, 1]} : vector<3x8x128xi32> to vector<1x1x128xi32>
    %473 = vector.shape_cast %472 : vector<1x1x128xi32> to vector<1x128xi32>
    %474 = vector.broadcast %473 : vector<1x128xi32> to vector<32x128xi32>
    %475 = arith.cmpi eq, %11, %474 : vector<32x128xi32>
    %cst_138 = arith.constant 0.000000e+00 : f32
    %476 = vector.broadcast %cst_138 : f32 to vector<32x128xf32>
    %477 = arith.select %475, %442, %476 : vector<32x128xi1>, vector<32x128xf32>
    %cst_139 = arith.constant dense<0.000000e+00> : vector<128xf32>
    %478 = vector.multi_reduction <add>, %477, %cst_139 [0] : vector<32x128xf32> to vector<128xf32>
    %479 = vector.shape_cast %478 : vector<128xf32> to vector<1x128xf32>
    %cst_140 = arith.constant 0.000000e+00 : f32
    %480 = vector.broadcast %cst_140 : f32 to vector<1x128xf32>
    %481 = arith.subf %480, %471 : vector<1x128xf32>
    %482 = arith.mulf %481, %479 : vector<1x128xf32>
    %483 = math.exp %482 : vector<1x128xf32>
    %cst_141 = arith.constant 1.000000e+00 : f32
    %484 = vector.broadcast %cst_141 : f32 to vector<1x128xf32>
    %485 = arith.addf %484, %483 : vector<1x128xf32>
    %486 = tpu.reciprocal %485 {approx = true} : vector<1x128xf32> -> vector<1x128xf32>
    %487 = arith.mulf %485, %486 : vector<1x128xf32>
    %cst_142 = arith.constant 2.000000e+00 : f32
    %488 = vector.broadcast %cst_142 : f32 to vector<1x128xf32>
    %489 = arith.subf %488, %487 : vector<1x128xf32>
    %490 = arith.mulf %486, %489 : vector<1x128xf32>
    %cst_143 = arith.constant 0.000000e+00 : f32
    %491 = vector.broadcast %cst_143 : f32 to vector<1x128xf32>
    %492 = arith.cmpf oeq, %471, %491 : vector<1x128xf32>
    %cst_144 = arith.constant 1.000000e+00 : f32
    %493 = vector.broadcast %cst_144 : f32 to vector<1x128xf32>
    %494 = arith.select %492, %493, %490 : vector<1x128xi1>, vector<1x128xf32>
    %495 = arith.mulf %469, %494 : vector<1x128xf32>
    %496 = vector.extract_strided_slice %7 {offsets = [2, 5, 0], sizes = [1, 1, 128], strides = [1, 1, 1]} : vector<3x8x128xf32> to vector<1x1x128xf32>
    %497 = vector.shape_cast %496 : vector<1x1x128xf32> to vector<1x128xf32>
    %498 = vector.extract_strided_slice %5 {offsets = [2, 5, 0], sizes = [1, 1, 128], strides = [1, 1, 1]} : vector<3x8x128xi32> to vector<1x1x128xi32>
    %499 = vector.shape_cast %498 : vector<1x1x128xi32> to vector<1x128xi32>
    %500 = vector.broadcast %499 : vector<1x128xi32> to vector<32x128xi32>
    %501 = arith.cmpi eq, %11, %500 : vector<32x128xi32>
    %cst_145 = arith.constant 0.000000e+00 : f32
    %502 = vector.broadcast %cst_145 : f32 to vector<32x128xf32>
    %503 = arith.select %501, %442, %502 : vector<32x128xi1>, vector<32x128xf32>
    %cst_146 = arith.constant dense<0.000000e+00> : vector<128xf32>
    %504 = vector.multi_reduction <add>, %503, %cst_146 [0] : vector<32x128xf32> to vector<128xf32>
    %505 = vector.shape_cast %504 : vector<128xf32> to vector<1x128xf32>
    %cst_147 = arith.constant 0.000000e+00 : f32
    %506 = vector.broadcast %cst_147 : f32 to vector<1x128xf32>
    %507 = arith.subf %506, %497 : vector<1x128xf32>
    %508 = arith.mulf %507, %505 : vector<1x128xf32>
    %509 = math.exp %508 : vector<1x128xf32>
    %cst_148 = arith.constant 1.000000e+00 : f32
    %510 = vector.broadcast %cst_148 : f32 to vector<1x128xf32>
    %511 = arith.addf %510, %509 : vector<1x128xf32>
    %512 = tpu.reciprocal %511 {approx = true} : vector<1x128xf32> -> vector<1x128xf32>
    %513 = arith.mulf %511, %512 : vector<1x128xf32>
    %cst_149 = arith.constant 2.000000e+00 : f32
    %514 = vector.broadcast %cst_149 : f32 to vector<1x128xf32>
    %515 = arith.subf %514, %513 : vector<1x128xf32>
    %516 = arith.mulf %512, %515 : vector<1x128xf32>
    %cst_150 = arith.constant 0.000000e+00 : f32
    %517 = vector.broadcast %cst_150 : f32 to vector<1x128xf32>
    %518 = arith.cmpf oeq, %497, %517 : vector<1x128xf32>
    %cst_151 = arith.constant 1.000000e+00 : f32
    %519 = vector.broadcast %cst_151 : f32 to vector<1x128xf32>
    %520 = arith.select %518, %519, %516 : vector<1x128xi1>, vector<1x128xf32>
    %521 = arith.mulf %495, %520 : vector<1x128xf32>
    %522 = vector.extract_strided_slice %3 {offsets = [6, 0], sizes = [1, 128], strides = [1, 1]} : vector<8x128xi32> to vector<1x128xi32>
    %523 = vector.broadcast %522 : vector<1x128xi32> to vector<16x128xi32>
    %524 = arith.cmpi eq, %10, %523 : vector<16x128xi32>
    %525 = arith.extui %524 : vector<16x128xi1> to vector<16x128xi32>
    %526 = arith.sitofp %525 : vector<16x128xi32> to vector<16x128xf32>
    %cst_152 = arith.constant dense<0.000000e+00> : vector<32x128xf32>
    %527 = tpu.matmul %9, %526, %cst_152 {dimension_numbers = #tpu.dot_dimension_numbers<[1], [0], [0], [1], [0, 0, 1, 1], [], []>} : vector<32x16xf32>, vector<16x128xf32>, vector<32x128xf32> -> vector<32x128xf32>
    %cst_153 = arith.constant 1.000000e+00 : f32
    %528 = vector.broadcast %cst_153 : f32 to vector<1x128xf32>
    %529 = vector.extract_strided_slice %7 {offsets = [0, 6, 0], sizes = [1, 1, 128], strides = [1, 1, 1]} : vector<3x8x128xf32> to vector<1x1x128xf32>
    %530 = vector.shape_cast %529 : vector<1x1x128xf32> to vector<1x128xf32>
    %531 = vector.extract_strided_slice %5 {offsets = [0, 6, 0], sizes = [1, 1, 128], strides = [1, 1, 1]} : vector<3x8x128xi32> to vector<1x1x128xi32>
    %532 = vector.shape_cast %531 : vector<1x1x128xi32> to vector<1x128xi32>
    %533 = vector.broadcast %532 : vector<1x128xi32> to vector<32x128xi32>
    %534 = arith.cmpi eq, %11, %533 : vector<32x128xi32>
    %cst_154 = arith.constant 0.000000e+00 : f32
    %535 = vector.broadcast %cst_154 : f32 to vector<32x128xf32>
    %536 = arith.select %534, %527, %535 : vector<32x128xi1>, vector<32x128xf32>
    %cst_155 = arith.constant dense<0.000000e+00> : vector<128xf32>
    %537 = vector.multi_reduction <add>, %536, %cst_155 [0] : vector<32x128xf32> to vector<128xf32>
    %538 = vector.shape_cast %537 : vector<128xf32> to vector<1x128xf32>
    %cst_156 = arith.constant 0.000000e+00 : f32
    %539 = vector.broadcast %cst_156 : f32 to vector<1x128xf32>
    %540 = arith.subf %539, %530 : vector<1x128xf32>
    %541 = arith.mulf %540, %538 : vector<1x128xf32>
    %542 = math.exp %541 : vector<1x128xf32>
    %cst_157 = arith.constant 1.000000e+00 : f32
    %543 = vector.broadcast %cst_157 : f32 to vector<1x128xf32>
    %544 = arith.addf %543, %542 : vector<1x128xf32>
    %545 = tpu.reciprocal %544 {approx = true} : vector<1x128xf32> -> vector<1x128xf32>
    %546 = arith.mulf %544, %545 : vector<1x128xf32>
    %cst_158 = arith.constant 2.000000e+00 : f32
    %547 = vector.broadcast %cst_158 : f32 to vector<1x128xf32>
    %548 = arith.subf %547, %546 : vector<1x128xf32>
    %549 = arith.mulf %545, %548 : vector<1x128xf32>
    %cst_159 = arith.constant 0.000000e+00 : f32
    %550 = vector.broadcast %cst_159 : f32 to vector<1x128xf32>
    %551 = arith.cmpf oeq, %530, %550 : vector<1x128xf32>
    %cst_160 = arith.constant 1.000000e+00 : f32
    %552 = vector.broadcast %cst_160 : f32 to vector<1x128xf32>
    %553 = arith.select %551, %552, %549 : vector<1x128xi1>, vector<1x128xf32>
    %554 = arith.mulf %528, %553 : vector<1x128xf32>
    %555 = vector.extract_strided_slice %7 {offsets = [1, 6, 0], sizes = [1, 1, 128], strides = [1, 1, 1]} : vector<3x8x128xf32> to vector<1x1x128xf32>
    %556 = vector.shape_cast %555 : vector<1x1x128xf32> to vector<1x128xf32>
    %557 = vector.extract_strided_slice %5 {offsets = [1, 6, 0], sizes = [1, 1, 128], strides = [1, 1, 1]} : vector<3x8x128xi32> to vector<1x1x128xi32>
    %558 = vector.shape_cast %557 : vector<1x1x128xi32> to vector<1x128xi32>
    %559 = vector.broadcast %558 : vector<1x128xi32> to vector<32x128xi32>
    %560 = arith.cmpi eq, %11, %559 : vector<32x128xi32>
    %cst_161 = arith.constant 0.000000e+00 : f32
    %561 = vector.broadcast %cst_161 : f32 to vector<32x128xf32>
    %562 = arith.select %560, %527, %561 : vector<32x128xi1>, vector<32x128xf32>
    %cst_162 = arith.constant dense<0.000000e+00> : vector<128xf32>
    %563 = vector.multi_reduction <add>, %562, %cst_162 [0] : vector<32x128xf32> to vector<128xf32>
    %564 = vector.shape_cast %563 : vector<128xf32> to vector<1x128xf32>
    %cst_163 = arith.constant 0.000000e+00 : f32
    %565 = vector.broadcast %cst_163 : f32 to vector<1x128xf32>
    %566 = arith.subf %565, %556 : vector<1x128xf32>
    %567 = arith.mulf %566, %564 : vector<1x128xf32>
    %568 = math.exp %567 : vector<1x128xf32>
    %cst_164 = arith.constant 1.000000e+00 : f32
    %569 = vector.broadcast %cst_164 : f32 to vector<1x128xf32>
    %570 = arith.addf %569, %568 : vector<1x128xf32>
    %571 = tpu.reciprocal %570 {approx = true} : vector<1x128xf32> -> vector<1x128xf32>
    %572 = arith.mulf %570, %571 : vector<1x128xf32>
    %cst_165 = arith.constant 2.000000e+00 : f32
    %573 = vector.broadcast %cst_165 : f32 to vector<1x128xf32>
    %574 = arith.subf %573, %572 : vector<1x128xf32>
    %575 = arith.mulf %571, %574 : vector<1x128xf32>
    %cst_166 = arith.constant 0.000000e+00 : f32
    %576 = vector.broadcast %cst_166 : f32 to vector<1x128xf32>
    %577 = arith.cmpf oeq, %556, %576 : vector<1x128xf32>
    %cst_167 = arith.constant 1.000000e+00 : f32
    %578 = vector.broadcast %cst_167 : f32 to vector<1x128xf32>
    %579 = arith.select %577, %578, %575 : vector<1x128xi1>, vector<1x128xf32>
    %580 = arith.mulf %554, %579 : vector<1x128xf32>
    %581 = vector.extract_strided_slice %7 {offsets = [2, 6, 0], sizes = [1, 1, 128], strides = [1, 1, 1]} : vector<3x8x128xf32> to vector<1x1x128xf32>
    %582 = vector.shape_cast %581 : vector<1x1x128xf32> to vector<1x128xf32>
    %583 = vector.extract_strided_slice %5 {offsets = [2, 6, 0], sizes = [1, 1, 128], strides = [1, 1, 1]} : vector<3x8x128xi32> to vector<1x1x128xi32>
    %584 = vector.shape_cast %583 : vector<1x1x128xi32> to vector<1x128xi32>
    %585 = vector.broadcast %584 : vector<1x128xi32> to vector<32x128xi32>
    %586 = arith.cmpi eq, %11, %585 : vector<32x128xi32>
    %cst_168 = arith.constant 0.000000e+00 : f32
    %587 = vector.broadcast %cst_168 : f32 to vector<32x128xf32>
    %588 = arith.select %586, %527, %587 : vector<32x128xi1>, vector<32x128xf32>
    %cst_169 = arith.constant dense<0.000000e+00> : vector<128xf32>
    %589 = vector.multi_reduction <add>, %588, %cst_169 [0] : vector<32x128xf32> to vector<128xf32>
    %590 = vector.shape_cast %589 : vector<128xf32> to vector<1x128xf32>
    %cst_170 = arith.constant 0.000000e+00 : f32
    %591 = vector.broadcast %cst_170 : f32 to vector<1x128xf32>
    %592 = arith.subf %591, %582 : vector<1x128xf32>
    %593 = arith.mulf %592, %590 : vector<1x128xf32>
    %594 = math.exp %593 : vector<1x128xf32>
    %cst_171 = arith.constant 1.000000e+00 : f32
    %595 = vector.broadcast %cst_171 : f32 to vector<1x128xf32>
    %596 = arith.addf %595, %594 : vector<1x128xf32>
    %597 = tpu.reciprocal %596 {approx = true} : vector<1x128xf32> -> vector<1x128xf32>
    %598 = arith.mulf %596, %597 : vector<1x128xf32>
    %cst_172 = arith.constant 2.000000e+00 : f32
    %599 = vector.broadcast %cst_172 : f32 to vector<1x128xf32>
    %600 = arith.subf %599, %598 : vector<1x128xf32>
    %601 = arith.mulf %597, %600 : vector<1x128xf32>
    %cst_173 = arith.constant 0.000000e+00 : f32
    %602 = vector.broadcast %cst_173 : f32 to vector<1x128xf32>
    %603 = arith.cmpf oeq, %582, %602 : vector<1x128xf32>
    %cst_174 = arith.constant 1.000000e+00 : f32
    %604 = vector.broadcast %cst_174 : f32 to vector<1x128xf32>
    %605 = arith.select %603, %604, %601 : vector<1x128xi1>, vector<1x128xf32>
    %606 = arith.mulf %580, %605 : vector<1x128xf32>
    %607 = vector.extract_strided_slice %3 {offsets = [7, 0], sizes = [1, 128], strides = [1, 1]} : vector<8x128xi32> to vector<1x128xi32>
    %608 = vector.broadcast %607 : vector<1x128xi32> to vector<16x128xi32>
    %609 = arith.cmpi eq, %10, %608 : vector<16x128xi32>
    %610 = arith.extui %609 : vector<16x128xi1> to vector<16x128xi32>
    %611 = arith.sitofp %610 : vector<16x128xi32> to vector<16x128xf32>
    %cst_175 = arith.constant dense<0.000000e+00> : vector<32x128xf32>
    %612 = tpu.matmul %9, %611, %cst_175 {dimension_numbers = #tpu.dot_dimension_numbers<[1], [0], [0], [1], [0, 0, 1, 1], [], []>} : vector<32x16xf32>, vector<16x128xf32>, vector<32x128xf32> -> vector<32x128xf32>
    %cst_176 = arith.constant 1.000000e+00 : f32
    %613 = vector.broadcast %cst_176 : f32 to vector<1x128xf32>
    %614 = vector.extract_strided_slice %7 {offsets = [0, 7, 0], sizes = [1, 1, 128], strides = [1, 1, 1]} : vector<3x8x128xf32> to vector<1x1x128xf32>
    %615 = vector.shape_cast %614 : vector<1x1x128xf32> to vector<1x128xf32>
    %616 = vector.extract_strided_slice %5 {offsets = [0, 7, 0], sizes = [1, 1, 128], strides = [1, 1, 1]} : vector<3x8x128xi32> to vector<1x1x128xi32>
    %617 = vector.shape_cast %616 : vector<1x1x128xi32> to vector<1x128xi32>
    %618 = vector.broadcast %617 : vector<1x128xi32> to vector<32x128xi32>
    %619 = arith.cmpi eq, %11, %618 : vector<32x128xi32>
    %cst_177 = arith.constant 0.000000e+00 : f32
    %620 = vector.broadcast %cst_177 : f32 to vector<32x128xf32>
    %621 = arith.select %619, %612, %620 : vector<32x128xi1>, vector<32x128xf32>
    %cst_178 = arith.constant dense<0.000000e+00> : vector<128xf32>
    %622 = vector.multi_reduction <add>, %621, %cst_178 [0] : vector<32x128xf32> to vector<128xf32>
    %623 = vector.shape_cast %622 : vector<128xf32> to vector<1x128xf32>
    %cst_179 = arith.constant 0.000000e+00 : f32
    %624 = vector.broadcast %cst_179 : f32 to vector<1x128xf32>
    %625 = arith.subf %624, %615 : vector<1x128xf32>
    %626 = arith.mulf %625, %623 : vector<1x128xf32>
    %627 = math.exp %626 : vector<1x128xf32>
    %cst_180 = arith.constant 1.000000e+00 : f32
    %628 = vector.broadcast %cst_180 : f32 to vector<1x128xf32>
    %629 = arith.addf %628, %627 : vector<1x128xf32>
    %630 = tpu.reciprocal %629 {approx = true} : vector<1x128xf32> -> vector<1x128xf32>
    %631 = arith.mulf %629, %630 : vector<1x128xf32>
    %cst_181 = arith.constant 2.000000e+00 : f32
    %632 = vector.broadcast %cst_181 : f32 to vector<1x128xf32>
    %633 = arith.subf %632, %631 : vector<1x128xf32>
    %634 = arith.mulf %630, %633 : vector<1x128xf32>
    %cst_182 = arith.constant 0.000000e+00 : f32
    %635 = vector.broadcast %cst_182 : f32 to vector<1x128xf32>
    %636 = arith.cmpf oeq, %615, %635 : vector<1x128xf32>
    %cst_183 = arith.constant 1.000000e+00 : f32
    %637 = vector.broadcast %cst_183 : f32 to vector<1x128xf32>
    %638 = arith.select %636, %637, %634 : vector<1x128xi1>, vector<1x128xf32>
    %639 = arith.mulf %613, %638 : vector<1x128xf32>
    %640 = vector.extract_strided_slice %7 {offsets = [1, 7, 0], sizes = [1, 1, 128], strides = [1, 1, 1]} : vector<3x8x128xf32> to vector<1x1x128xf32>
    %641 = vector.shape_cast %640 : vector<1x1x128xf32> to vector<1x128xf32>
    %642 = vector.extract_strided_slice %5 {offsets = [1, 7, 0], sizes = [1, 1, 128], strides = [1, 1, 1]} : vector<3x8x128xi32> to vector<1x1x128xi32>
    %643 = vector.shape_cast %642 : vector<1x1x128xi32> to vector<1x128xi32>
    %644 = vector.broadcast %643 : vector<1x128xi32> to vector<32x128xi32>
    %645 = arith.cmpi eq, %11, %644 : vector<32x128xi32>
    %cst_184 = arith.constant 0.000000e+00 : f32
    %646 = vector.broadcast %cst_184 : f32 to vector<32x128xf32>
    %647 = arith.select %645, %612, %646 : vector<32x128xi1>, vector<32x128xf32>
    %cst_185 = arith.constant dense<0.000000e+00> : vector<128xf32>
    %648 = vector.multi_reduction <add>, %647, %cst_185 [0] : vector<32x128xf32> to vector<128xf32>
    %649 = vector.shape_cast %648 : vector<128xf32> to vector<1x128xf32>
    %cst_186 = arith.constant 0.000000e+00 : f32
    %650 = vector.broadcast %cst_186 : f32 to vector<1x128xf32>
    %651 = arith.subf %650, %641 : vector<1x128xf32>
    %652 = arith.mulf %651, %649 : vector<1x128xf32>
    %653 = math.exp %652 : vector<1x128xf32>
    %cst_187 = arith.constant 1.000000e+00 : f32
    %654 = vector.broadcast %cst_187 : f32 to vector<1x128xf32>
    %655 = arith.addf %654, %653 : vector<1x128xf32>
    %656 = tpu.reciprocal %655 {approx = true} : vector<1x128xf32> -> vector<1x128xf32>
    %657 = arith.mulf %655, %656 : vector<1x128xf32>
    %cst_188 = arith.constant 2.000000e+00 : f32
    %658 = vector.broadcast %cst_188 : f32 to vector<1x128xf32>
    %659 = arith.subf %658, %657 : vector<1x128xf32>
    %660 = arith.mulf %656, %659 : vector<1x128xf32>
    %cst_189 = arith.constant 0.000000e+00 : f32
    %661 = vector.broadcast %cst_189 : f32 to vector<1x128xf32>
    %662 = arith.cmpf oeq, %641, %661 : vector<1x128xf32>
    %cst_190 = arith.constant 1.000000e+00 : f32
    %663 = vector.broadcast %cst_190 : f32 to vector<1x128xf32>
    %664 = arith.select %662, %663, %660 : vector<1x128xi1>, vector<1x128xf32>
    %665 = arith.mulf %639, %664 : vector<1x128xf32>
    %666 = vector.extract_strided_slice %7 {offsets = [2, 7, 0], sizes = [1, 1, 128], strides = [1, 1, 1]} : vector<3x8x128xf32> to vector<1x1x128xf32>
    %667 = vector.shape_cast %666 : vector<1x1x128xf32> to vector<1x128xf32>
    %668 = vector.extract_strided_slice %5 {offsets = [2, 7, 0], sizes = [1, 1, 128], strides = [1, 1, 1]} : vector<3x8x128xi32> to vector<1x1x128xi32>
    %669 = vector.shape_cast %668 : vector<1x1x128xi32> to vector<1x128xi32>
    %670 = vector.broadcast %669 : vector<1x128xi32> to vector<32x128xi32>
    %671 = arith.cmpi eq, %11, %670 : vector<32x128xi32>
    %cst_191 = arith.constant 0.000000e+00 : f32
    %672 = vector.broadcast %cst_191 : f32 to vector<32x128xf32>
    %673 = arith.select %671, %612, %672 : vector<32x128xi1>, vector<32x128xf32>
    %cst_192 = arith.constant dense<0.000000e+00> : vector<128xf32>
    %674 = vector.multi_reduction <add>, %673, %cst_192 [0] : vector<32x128xf32> to vector<128xf32>
    %675 = vector.shape_cast %674 : vector<128xf32> to vector<1x128xf32>
    %cst_193 = arith.constant 0.000000e+00 : f32
    %676 = vector.broadcast %cst_193 : f32 to vector<1x128xf32>
    %677 = arith.subf %676, %667 : vector<1x128xf32>
    %678 = arith.mulf %677, %675 : vector<1x128xf32>
    %679 = math.exp %678 : vector<1x128xf32>
    %cst_194 = arith.constant 1.000000e+00 : f32
    %680 = vector.broadcast %cst_194 : f32 to vector<1x128xf32>
    %681 = arith.addf %680, %679 : vector<1x128xf32>
    %682 = tpu.reciprocal %681 {approx = true} : vector<1x128xf32> -> vector<1x128xf32>
    %683 = arith.mulf %681, %682 : vector<1x128xf32>
    %cst_195 = arith.constant 2.000000e+00 : f32
    %684 = vector.broadcast %cst_195 : f32 to vector<1x128xf32>
    %685 = arith.subf %684, %683 : vector<1x128xf32>
    %686 = arith.mulf %682, %685 : vector<1x128xf32>
    %cst_196 = arith.constant 0.000000e+00 : f32
    %687 = vector.broadcast %cst_196 : f32 to vector<1x128xf32>
    %688 = arith.cmpf oeq, %667, %687 : vector<1x128xf32>
    %cst_197 = arith.constant 1.000000e+00 : f32
    %689 = vector.broadcast %cst_197 : f32 to vector<1x128xf32>
    %690 = arith.select %688, %689, %686 : vector<1x128xi1>, vector<1x128xf32>
    %691 = arith.mulf %665, %690 : vector<1x128xf32>
    %692 = tpu.concatenate %96, %181, %266, %351, %436, %521, %606, %691 in 0 : vector<1x128xf32>, vector<1x128xf32>, vector<1x128xf32>, vector<1x128xf32>, vector<1x128xf32>, vector<1x128xf32>, vector<1x128xf32>, vector<1x128xf32> -> vector<8x128xf32>
    %c0_198 = arith.constant 0 : index
    %c0_199 = arith.constant 0 : index
    %c0_200 = arith.constant 0 : index
    %693 = vector.load %arg6[%c0_198, %c0_199, %c0_200] : memref<1x8x128xf32, #tpu.memory_space<vmem>>, vector<1x8x128xf32>
    %694 = vector.shape_cast %693 : vector<1x8x128xf32> to vector<8x128xf32>
    %695 = vector.shape_cast %692 : vector<8x128xf32> to vector<1x8x128xf32>
    tpu.vector_store %arg6[%c0_198, %c0_199, %c0_200], %695 {strides = array<i32>} : memref<1x8x128xf32, #tpu.memory_space<vmem>>, vector<1x8x128xf32>,
    return
  }
  func.func @transform_0(%arg0: i32) -> (i32, i32, i32) {
    %c0_i32 = arith.constant 0 : i32
    %c0_i32_0 = arith.constant 0 : i32
    %c0_i32_1 = arith.constant 0 : i32
    return %arg0, %c0_i32, %c0_i32_0 : i32, i32, i32
  }
  func.func @transform_1(%arg0: i32) -> (i32, i32, i32, i32) {
    %c0_i32 = arith.constant 0 : i32
    %c0_i32_0 = arith.constant 0 : i32
    %c0_i32_1 = arith.constant 0 : i32
    %c0_i32_2 = arith.constant 0 : i32
    return %arg0, %c0_i32, %c0_i32_0, %c0_i32_1 : i32, i32, i32, i32
  }
  func.func @transform_2(%arg0: i32) -> (i32, i32, i32, i32) {
    %c0_i32 = arith.constant 0 : i32
    %c0_i32_0 = arith.constant 0 : i32
    %c0_i32_1 = arith.constant 0 : i32
    %c0_i32_2 = arith.constant 0 : i32
    return %arg0, %c0_i32, %c0_i32_0, %c0_i32_1 : i32, i32, i32, i32
  }
  func.func @transform_3(%arg0: i32) -> (i32, i32) {
    %c0_i32 = arith.constant 0 : i32
    %c0_i32_0 = arith.constant 0 : i32
    %c0_i32_1 = arith.constant 0 : i32
    return %c0_i32, %c0_i32_0 : i32, i32
  }
  func.func @transform_4(%arg0: i32) -> (i32, i32) {
    %c0_i32 = arith.constant 0 : i32
    %c0_i32_0 = arith.constant 0 : i32
    %c0_i32_1 = arith.constant 0 : i32
    return %c0_i32, %c0_i32_0 : i32, i32
  }
  func.func @transform_5(%arg0: i32) -> (i32, i32, i32) {
    %c0_i32 = arith.constant 0 : i32
    %c0_i32_0 = arith.constant 0 : i32
    %c0_i32_1 = arith.constant 0 : i32
    return %arg0, %c0_i32, %c0_i32_0 : i32, i32, i32
  }
}

</mosaic_0001>

<bundles_post_ra>
// kernel: _hs_forward_impl.1
= control target key start
LH: loop header
LB: loop body
LE: loop exit
PB: predicated region body
PF: predicated region fallthrough
CT: control target
= control target key end

     0   :  { %10 = vsyncpa [#allocation3], 0  ;;  %s3706_s0 = inlined_call_operand.vmem [shape: s32[2,8,128], index: 0, kind: input, shape index: {}]   ;;  %s3707_s1 = inlined_call_operand.vmem [shape: s32[2,3,8,128], index: 1, kind: input, shape index: {}]   ;;  %s3708_s2 = inlined_call_operand.vmem [shape: f32[2,3,8,128], index: 2, kind: input, shape index: {}]   ;;  %s3709_s3 = inlined_call_operand.vmem [shape: f32[16,8], index: 3, kind: input, shape index: {}]   ;;  %s3710_s4 = inlined_call_operand.vmem [shape: f32[32,8], index: 4, kind: input, shape index: {}]   ;;  %s3711_s5 = inlined_call_operand.hbm [shape: f32[2,8,128], index: 5, kind: output, shape index: {}]  }
   0x1   :  { %12 = vsyncpa [#allocation3 + $0x1], 0  ;;  %s2507_s18 = smov 0   ;;  %s2509_s19 = smov 0  }
   0x2   :  { %s2511_s20 = smov 0   ;;  %s2513_s21 = smov 0  }
   0x3 LB: > { %s2528_s22 = sadd.s32 4294967295, %s2473_s21   ;;  %s2009_s23 = sadd.s32 4294967294, %s2473_s21   ;;  %s2473_s21 = sphi %s2513_s21, %s3773_s21   ;;  %s2469_s20 = sphi %s2511_s20, %s3772_s20   ;;  %s2465_s19 = sphi %s2509_s19, %s3771_s19   ;;  %s2461_s18 = sphi %s2507_s18, %s3770_s18  }
   0x4   : > { %s2532_s24 = sadd.s32 1, %s2473_s21   ;;  %s145_s25 = sadd.s32 1, %s2469_s20 }
   0x5   : > { %s142_s26 = ssub.s32 %s2473_s21, %s2532_s24  ;;  %p155_p0 = scmp.ne.s32.totalorder %s2469_s20, %s2465_s19 }
   0x6   : > { %p143_p1 = scmp.eq.s32.totalorder %s142_s26, 0  ;;  %p156_p2 = scmp.eq.s32.totalorder %s2528_s22, 1 }
   0x7   : > { %p161_p3 = scmp.ne.s32.totalorder %s2465_s19, %s2461_s18  ;;  %p162_p4 = scmp.eq.s32.totalorder %s2009_s23, 1 }
   0x8   : > { %s2543_s27 = scalar_select %p143_p1, %s2469_s20, %s145_s25  }
   0x9   : > { %p2545_p5 = por %p156_p2, %p155_p0  ;;  %p2549_p6 = por %p162_p4, %p161_p3 }
   0xa   : > { %p2012_p7 = scmp.ge.s32.totalorder %s2473_s21, 1  ;;  %p209_p8 = scmp.lt.s32.totalorder %s2473_s21, 3 }
   0xc   : > { %p210_p9 = pnand %p2012_p7, %p209_p8 }
   0xe   : > { %213 = sbr.rel (%p210_p9) target bundleno = 654 (0x28e), region = 40 }
  0x15   : > { %v260_v0 = vld [vmem:[%s3709_s3] sm:$0xff]  ;;  %v261_v1 = vld [vmem:[%s3709_s3 + $0x8] sm:$0xff]  ;;  %vm273_vm0 = vcmask 64512   ;;  %p246_p10 = scmp.lt.s32.totalorder %s2528_s22, 1  ;;  %v377_v3 = vlaneseq  ;;  %v264_v13 = vld [vmem:[%s3710_s4 + $0x10] sm:$0xff] }
  0x16   : > { %v262_v2 = vld [vmem:[%s3710_s4] sm:$0xff]  ;;  %v2235_v4 = vpack.c.bf16 %v261_v1, %v260_v0  ;;  %vm2236_vm1 = vmpackc.low %vm273_vm0, %vm273_vm0  ;;  %v263_v12 = vld [vmem:[%s3710_s4 + $0x8] sm:$0xff]  ;;  %v2475_v14 = vmov 1.0|1.0  }
  0x17   : > { %2149 = vmatprep.mubr.msk.f32.mxu0 %vm273_vm0, %v262_v2  ;;  %s2569_s11 = scalar_select %p246_p10, %s2528_s22, 1  ;;  %v2571_v5 = vshrl.u32 %v377_v3, 7  ;;  %v265_v15 = vld [vmem:[%s3710_s4 + $0x18] sm:$0xff] }
  0x18   : > { %2237 = vmatprep.subr.msk.bf16.mxu0 %vm2236_vm1, %v2235_v4 }
  0x19   : > { %2240 = vmatpush3.bf16.xpose.msk.msra.mxu0 %vm2236_vm1, %v2235_v4  ;;  %s2014_s12 = sshll.u32 %s2569_s11, 3  ;;  %v2575_v6 = vsub.s32 0, %v2571_v5  ;;  %v2578_v7 = vsub.s32 2, %v2571_v5  ;;  %v2584_v8 = vadd.s32 8, %v2571_v5  ;;  %v2613_v16 = vsub.s32 1, %v2571_v5  ;;  %s2273_s6 = smul.u32 24, %s2569_s11 }
  0x1a   : > { %s249_s15 = scalar_lea.vmem %s3706_s0, %s2014_s12  ;;  %v2616_v17 = vsub.s32 4, %v2571_v5  ;;  %v2641_v22 = vsub.s32 3, %v2571_v5  ;;  %v2644_v23 = vsub.s32 6, %v2571_v5  ;;  %v2655_v27 = vsub.s32 5, %v2571_v5  ;;  %s243_s11 = sand.u32 1, %s2465_s19  }
  0x1b   : > { %v2586_v9 = vld [vmem:[%s249_s15] sm:$0xff]  ;;  %v2688_v34 = vsub.s32 7, %v2571_v5  ;;  %s254_s9 = scalar_lea.vmem %s3707_s1, %s2273_s6  ;;  %s2745_s13 = scalar_lea.vmem %s3708_s2, %s2273_s6  ;;  %v2787_v52 = vadd.s32 24, %v2571_v5  ;;  %v2804_v53 = vadd.s32 16, %v2571_v5 }
  0x1c   : > { %v385_v10 = vrot.slane %v2586_v9, %v2575_v6  ;;  %v778_v11 = vrot.slane %v2586_v9, %v2578_v7  ;;  %v591_v18 = vrot.slane %v2586_v9, %v2613_v16  ;;  %v1152_v19 = vrot.slane %v2586_v9, %v2616_v17  ;;  %v267_v37 = vld [vmem:[%s254_s9] sm:$0xff]  ;;  %v268_v38 = vld [vmem:[%s254_s9 + $0x8] sm:$0xff]  ;;  %v2747_v39 = vld [vmem:[%s254_s9 + $0x10] sm:$0xff]  ;;  %s2013_s14 = sshll.u32 %s243_s11, 3  ;;  %s2088_s15 = sshll.u32 %s2528_s22, 7 }
  0x1d   : > { %v965_v24 = vrot.slane %v2586_v9, %v2641_v22  ;;  %v1526_v25 = vrot.slane %v2586_v9, %v2644_v23  ;;  %v1339_v32 = vrot.slane %v2586_v9, %v2655_v27  ;;  %v1713_v36 = vrot.slane %v2586_v9, %v2688_v34  ;;  %v2750_v40 = vld [vmem:[%s2745_s13] sm:$0xff]  ;;  %v2756_v42 = vld [vmem:[%s2745_s13 + $0x8] sm:$0xff]  ;;  %v272_v43 = vld [vmem:[%s2745_s13 + $0x10] sm:$0xff]  ;;  %s245_s16 = scalar_lea.vmem [#allocation2], %s2013_s14  ;;  %s3664_s26 = scalar_lea.hbm %s3711_s5, %s2088_s15 }
  0x1e   : > { %vm386_vm2 = vcmp.eq.s32.totalorder %v2571_v5, %v385_v10  ;;  %vm387_vm3 = vcmp.eq.s32.totalorder %v2584_v8, %v385_v10  ;;  %vm779_vm5 = vcmp.eq.s32.totalorder %v2571_v5, %v778_v11  ;;  %vm780_vm6 = vcmp.eq.s32.totalorder %v2584_v8, %v778_v11  ;;  %s1926_s17 = sshll.u32 %s245_s16, 4  ;;  %s1913_s22 = scalar_lea.sflag [#allocation3], %s243_s11  ;;  %s3666_s17 = int_to_ptr.vmem [resolvable:$true] %s1926_s17 }
  0x1f   : > { %vm2241_vm4 = vmpackc.low %vm387_vm3, %vm386_vm2  ;;  %vm592_vm8 = vcmp.eq.s32.totalorder %v2571_v5, %v591_v18  ;;  %vm593_vm9 = vcmp.eq.s32.totalorder %v2584_v8, %v591_v18  ;;  %vm1153_vm10 = vcmp.eq.s32.totalorder %v2571_v5, %v1152_v19  ;;  %vm1154_vm11 = vcmp.eq.s32.totalorder %v2584_v8, %v1152_v19  ;;  %s2411_s30 = scalar_lea.vmem %s3666_s17, 128  ;;  %s2476_s6 = smov [#allocation2]  }
  0x20   : > { %2150 = vmatmul.mubr.msk.f32.vlgmr.msra.gmra.mrb[0].mxu0 %vm273_vm0, %v263_v12  ;;  %2242 = vmatprep.subr.msk.bf16.mxu1 %vm2241_vm4, %v2475_v14  ;;  %vm2249_vm7 = vmpackc.low %vm780_vm6, %vm779_vm5  ;;  %vm966_vm14 = vcmp.eq.s32.totalorder %v2571_v5, %v965_v24  ;;  %vm967_vm15 = vcmp.eq.s32.totalorder %v2584_v8, %v965_v24  ;;  %vm1527_vm1 = vcmp.eq.s32.totalorder %v2571_v5, %v1526_v25  ;;  %v2777_v49 = vsub.f32 0.0, %v2750_v40  ;;  %p2412_p11 = scmp.ne.s32.totalorder %s3666_s17, %s2411_s30  ;;  %s2415_s7 = sshll.u32 %s2476_s6, 4  ;;  %s2416_s7 = int_to_ptr.vmem [resolvable:$false] %s2415_s7 }
  0x21   : > { %2152 = vmatprep.mubr.msk.f32.mxu0 %vm273_vm0, %v264_v13  ;;  %2244 = vmatpush3.bf16.msk.msra.mxu1 %vm2241_vm4, %v2475_v14  ;;  %vm2626_vm12 = vmpackc.low %vm593_vm9, %vm592_vm8  ;;  %vm1528_vm2 = vcmp.eq.s32.totalorder %v2584_v8, %v1526_v25  ;;  %vm1340_vm5 = vcmp.eq.s32.totalorder %v2571_v5, %v1339_v32  ;;  %vm1341_vm6 = vcmp.eq.s32.totalorder %v2584_v8, %v1339_v32  ;;  %v2780_v50 = vsub.f32 0.0, %v2756_v42  ;;  %s2417_s8 = scalar_lea.vmem %s2416_s7, 256  ;;  %p2418_p0 = scmp.lt.s32.totalorder %s3666_s17, %s2416_s7 }
  0x22   : > { %2250 = vmatprep.subr.msk.bf16.mxu0 %vm2249_vm7, %v2475_v14  ;;  %2246 = vmatprep.subr.msk.bf16.mxu1 %vm2626_vm12, %v2475_v14  ;;  %vm2633_vm13 = vmpackc.low %vm1154_vm11, %vm1153_vm10  ;;  %vm1714_vm8 = vcmp.eq.s32.totalorder %v2571_v5, %v1713_v36  ;;  %vm1715_vm9 = vcmp.eq.s32.totalorder %v2584_v8, %v1713_v36  ;;  %v2753_v41 = vrot.slane %v267_v37, %v2575_v6  ;;  %v2782_v51 = vsub.f32 0.0, %v272_v43  ;;  %p2413_p12 = pnand %p2412_p11, %p2545_p5  ;;  %p2419_p1 = scmp.lt.s32.totalorder %s2417_s8, %s2411_s30 }
  0x23   : > { %2252 = vmatpush3.bf16.msk.msra.mxu0 %vm2249_vm7, %v2475_v14  ;;  %vm2657_vm3 = vmpackc.low %vm967_vm15, %vm966_vm14  ;;  %v2760_v44 = vrot.slane %v268_v38, %v2575_v6  ;;  %v2764_v45 = vrot.slane %v2747_v39, %v2575_v6  ;;  %v2767_v46 = vrot.slane %v267_v37, %v2578_v7  ;;  %v2770_v47 = vrot.slane %v268_v38, %v2578_v7 }
  0x24   : > { %2153 = vmatmul.mubr.msk.f32.gmra.mrb[2].mxu0 %vm273_vm0, %v265_v15  ;;  %2258 = vmatprep.subr.msk.bf16.mxu0 %vm2633_vm13, %v2475_v14  ;;  %vm392_vm0 = vcmask 130048   ;;  %vm2663_vm4 = vmpackc.low %vm1528_vm2, %vm1527_vm1  ;;  %v2774_v48 = vrot.slane %v2747_v39, %v2578_v7  ;;  %vm495_vm11 = vcmp.eq.s32.totalorder %v2584_v8, %v2753_v41  ;;  %vm494_vm1 = vcmp.eq.s32.totalorder %v2571_v5, %v2753_v41  ;;  %p2414_p13 = pneg %p2413_p12  ;;  %p2420_p2 = por %p2419_p1, %p2418_p0 }
  0x25   : > { %vm2696_vm7 = vmpackc.low %vm1341_vm6, %vm1340_vm5  ;;  %vm875_vm14 = vcmp.eq.s32.totalorder %v2584_v8, %v2767_v46  ;;  %vm905_vm15 = vcmp.eq.s32.totalorder %v2584_v8, %v2770_v47  ;;  %vm526_vm2 = vcmp.eq.s32.totalorder %v2571_v5, %v2760_v44  ;;  %v2819_v54 = vrot.slane %v267_v37, %v2613_v16 }
  0x26   : > { %vm2269_vm10 = vmpackc.low %vm1715_vm9, %vm1714_vm8  ;;  %v2822_v55 = vrot.slane %v268_v38, %v2613_v16  ;;  %vm562_vm9 = vcmp.eq.s32.totalorder %v2787_v52, %v2764_v45  ;;  %v2838_v56 = vrot.slane %v2747_v39, %v2613_v16  ;;  %v2841_v57 = vrot.slane %v267_v37, %v2616_v17  ;;  %p2421_p3 = pnand %p2420_p2, %p2414_p13 }
  0x27   : > { %vm876_vm6 = vcmp.eq.s32.totalorder %v2804_v53, %v2767_v46  ;;  %v2848_v58 = vrot.slane %v268_v38, %v2616_v17  ;;  %v2852_v59 = vrot.slane %v2747_v39, %v2616_v17  ;;  %vm906_vm5 = vcmp.eq.s32.totalorder %v2804_v53, %v2770_v47 }
  0x28   : > { %vm937_vm8 = vcmp.eq.s32.totalorder %v2804_v53, %v2774_v48  ;;  %v2863_v60 = vrot.slane %v267_v37, %v2641_v22  ;;  %v2866_v61 = vrot.slane %v268_v38, %v2641_v22  ;;  %v2870_v62 = vrot.slane %v2747_v39, %v2641_v22 }
  0x29   : > { %v2873_v63 = vrot.slane %v267_v37, %v2644_v23  ;;  %v2876_v0 = vrot.slane %v268_v38, %v2644_v23  ;;  %v2880_v1 = vrot.slane %v2747_v39, %v2644_v23  ;;  %v2883_v2 = vrot.slane %v267_v37, %v2655_v27 }
  0x2a   : > { %v2890_v6 = vrot.slane %v268_v38, %v2655_v27  ;;  %v2894_v7 = vrot.slane %v2747_v39, %v2655_v27  ;;  %v2897_v9 = vrot.slane %v267_v37, %v2688_v34  ;;  %v2900_v10 = vrot.slane %v268_v38, %v2688_v34 }
  0x2c   : > { %3732 = vst [vmem:[#allocation5_spill] sm:$0xff] %v2890_v6  ;;  %3733 = vst [vmem:[#allocation6_spill] sm:$0xff] %v2894_v7 }
  0x2d   : > { %3734 = vst [vmem:[#allocation7_spill] sm:$0xff] %v2897_v9  ;;  %3735 = vst [vmem:[#allocation8_spill] sm:$0xff] %v2900_v10 }
  0xf3   : > { %v2151_v26 = vpop.f32.mrb[0].mxu0 }
  0xf4   : > { %v358_v28 = vpop.f32.mrb[1].mxu0 }
  0xf5   : > { %2159 = vmatprep.mubr.msk.f32.mxu1 %vm392_vm0, %v358_v28  ;;  %2179 = vmatprep.mubr.msk.f32.mxu0 %vm392_vm0, %v358_v28 }
  0xf6   : > { %2160 = vmatmul.mubr.msk.f32.vlgmr.msra.gmra.mrb[0].mxu1 %vm392_vm0, %v2151_v26  ;;  %2180 = vmatmul.mubr.msk.f32.vlgmr.msra.gmra.mrb[4].mxu0 %vm392_vm0, %v2151_v26 }
  0xf7   : > { %2248 = vmatpush3.bf16.msk.msra.mxu1 %vm2626_vm12, %v2475_v14  ;;  %v2154_v31 = vpop.f32.mrb[2].mxu0  ;;  %2260 = vmatpush3.bf16.msk.msra.mxu0 %vm2633_vm13, %v2475_v14  ;;  %vm527_vm12 = vcmp.eq.s32.totalorder %v2584_v8, %v2760_v44  ;;  %vm560_vm13 = vcmp.eq.s32.totalorder %v2584_v8, %v2764_v45 }
  0xf8   : > { %v368_v33 = vpop.f32.mrb[3].mxu0  ;;  %2254 = vmatprep.subr.msk.bf16.mxu1 %vm2657_vm3, %v2475_v14  ;;  %2266 = vmatprep.subr.msk.bf16.mxu0 %vm2663_vm4, %v2475_v14 }
  0xf9   : > { %2162 = vmatprep.mubr.msk.f32.mxu1 %vm392_vm0, %v368_v33  ;;  %2182 = vmatprep.mubr.msk.f32.mxu0 %vm392_vm0, %v368_v33 }
  0xfa   : > { %2163 = vmatmul.mubr.msk.f32.gmra.mrb[2].mxu1 %vm392_vm0, %v2154_v31  ;;  %2183 = vmatmul.mubr.msk.f32.gmra.mrb[6].mxu0 %vm392_vm0, %v2154_v31 }
  0xfb   : > { %2169 = vmatprep.mubr.msk.f32.mxu1 %vm392_vm0, %v358_v28  ;;  %2199 = vmatprep.mubr.msk.f32.mxu0 %vm392_vm0, %v358_v28 }
  0xfe   : > { %2170 = vmatmul.mubr.msk.f32.vlgmr.msra.gmra.mrb[4].mxu1 %vm392_vm0, %v2151_v26  ;;  %2200 = vmatmul.mubr.msk.f32.vlgmr.msra.gmra.mrb[8].mxu0 %vm392_vm0, %v2151_v26 }
  0xff   : > { %2256 = vmatpush3.bf16.msk.msra.mxu1 %vm2657_vm3, %v2475_v14  ;;  %2172 = vmatprep.mubr.msk.f32.mxu1 %vm392_vm0, %v368_v33  ;;  %vm559_vm3 = vcmp.eq.s32.totalorder %v2571_v5, %v2764_v45 }
 0x100   : > { %2202 = vmatprep.mubr.msk.f32.mxu0 %vm392_vm0, %v368_v33  ;;  %2268 = vmatpush3.bf16.msk.msra.mxu0 %vm2663_vm4, %v2475_v14  ;;  %vm874_vm4 = vcmp.eq.s32.totalorder %v2571_v5, %v2767_v46 }
 0x101   : > { %2262 = vmatprep.subr.msk.bf16.mxu1 %vm2696_vm7, %v2475_v14 }
 0x102   : > { %2173 = vmatmul.mubr.msk.f32.gmra.mrb[6].mxu1 %vm392_vm0, %v2154_v31  ;;  %2203 = vmatmul.mubr.msk.f32.gmra.mrb[10].mxu0 %vm392_vm0, %v2154_v31 }
 0x103   : > { %2189 = vmatprep.mubr.msk.f32.mxu1 %vm392_vm0, %v358_v28  ;;  %2219 = vmatprep.mubr.msk.f32.mxu0 %vm392_vm0, %v358_v28 }
 0x106   : > { %2190 = vmatmul.mubr.msk.f32.vlgmr.msra.gmra.mrb[8].mxu1 %vm392_vm0, %v2151_v26  ;;  %2220 = vmatmul.mubr.msk.f32.vlgmr.msra.gmra.mrb[12].mxu0 %vm392_vm0, %v2151_v26 }
 0x107   : > { %2264 = vmatpush3.bf16.msk.msra.mxu1 %vm2696_vm7, %v2475_v14  ;;  %2192 = vmatprep.mubr.msk.f32.mxu1 %vm392_vm0, %v368_v33  ;;  %vm1249_vm7 = vcmp.eq.s32.totalorder %v2584_v8, %v2841_v57 }
 0x108   : > { %2222 = vmatprep.mubr.msk.f32.mxu0 %vm392_vm0, %v368_v33  ;;  %2270 = vmatprep.subr.msk.bf16.mxu1 %vm2269_vm10, %v2475_v14 }
 0x10a   : > { %2193 = vmatmul.mubr.msk.f32.gmra.mrb[10].mxu1 %vm392_vm0, %v2154_v31  ;;  %2223 = vmatmul.mubr.msk.f32.gmra.mrb[14].mxu0 %vm392_vm0, %v2154_v31 }
 0x10b   : > { %2209 = vmatprep.mubr.msk.f32.mxu1 %vm392_vm0, %v358_v28 }
 0x10e   : > { %2210 = vmatmul.mubr.msk.f32.vlgmr.msra.gmra.mrb[12].mxu1 %vm392_vm0, %v2151_v26 }
 0x10f   : > { %2272 = vmatpush3.bf16.msk.msra.mxu1 %vm2269_vm10, %v2475_v14  ;;  %2212 = vmatprep.mubr.msk.f32.mxu1 %vm392_vm0, %v368_v33  ;;  %vm749_vm10 = vcmp.eq.s32.totalorder %v2584_v8, %v2838_v56 }
 0x112   : > { %2213 = vmatmul.mubr.msk.f32.gmra.mrb[14].mxu1 %vm392_vm0, %v2154_v31 }
 0x113   : > { %2229 = vmatprep.mubr.msk.f32.mxu1 %vm392_vm0, %v358_v28 }
 0x116   : > { %2230 = vmatmul.mubr.msk.f32.vlgmr.msra.gmra.mrb[16].mxu1 %vm392_vm0, %v2151_v26 }
 0x117   : > { %2232 = vmatprep.mubr.msk.f32.mxu1 %vm392_vm0, %v368_v33 }
 0x11a   : > { %2233 = vmatmul.mubr.msk.f32.gmra.mrb[18].mxu1 %vm392_vm0, %v2154_v31  ;;  %vm936_vm0 = vcmp.eq.s32.totalorder %v2584_v8, %v2774_v48 }
 0x1c9   : > { %v2161_v3 = vpop.f32.mrb[0].mxu1  ;;  %v2181_v4 = vpop.f32.mrb[4].mxu0 }
 0x1ca   : > { %v499_v11 = vsel %vm495_vm11, %v2161_v3, 0.0  ;;  %v531_v12 = vsel %vm527_vm12, %v2161_v3, 0.0  ;;  %v564_v13 = vsel %vm560_vm13, %v2161_v3, 0.0  ;;  %v879_v14 = vsel %vm875_vm14, %v2181_v4, 0.0  ;;  %v471_v15 = vpop.f32.mrb[1].mxu1  ;;  %v851_v16 = vpop.f32.mrb[5].mxu0 }
 0x1cb   : > { %v909_v17 = vsel %vm905_vm15, %v2181_v4, 0.0  ;;  %v940_v18 = vsel %vm936_vm0, %v2181_v4, 0.0  ;;  %v498_v19 = vsel %vm494_vm1, %v471_v15, 0.0  ;;  %v530_v20 = vsel %vm526_vm2, %v471_v15, 0.0 }
 0x1cc   : > { %vm1279_vm11 = vcmp.eq.s32.totalorder %v2584_v8, %v2848_v58  ;;  %vm1310_vm12 = vcmp.eq.s32.totalorder %v2584_v8, %v2852_v59  ;;  %v502_v21 = vadd.f32 %v499_v11, %v498_v19  ;;  %v534_v22 = vadd.f32 %v531_v12, %v530_v20 }
 0x1cd   : > { %v563_v23 = vsel %vm559_vm3, %v471_v15, 0.0  ;;  %v878_v24 = vsel %vm874_vm4, %v851_v16, 0.0  ;;  %vm3736_vm13 = vcmp.eq.s32.totalorder %v2571_v5, %v2770_v47  ;;  %vm3737_vm14 = vcmp.eq.s32.totalorder %v2571_v5, %v2774_v48  ;;  %v2164_v29 = vpop.f32.mrb[2].mxu1  ;;  %v2184_v30 = vpop.f32.mrb[6].mxu0 }
 0x1ce   : > { %v567_v25 = vadd.f32 %v564_v13, %v563_v23  ;;  %v882_v26 = vadd.f32 %v879_v14, %v878_v24  ;;  %v908_v27 = vsel %vm3736_vm13, %v851_v16, 0.0  ;;  %v939_v28 = vsel %vm3737_vm14, %v851_v16, 0.0  ;;  %v481_v36 = vpop.f32.mrb[3].mxu1  ;;  %v861_v37 = vpop.f32.mrb[7].mxu0 }
 0x1cf   : > { %vm687_vm15 = vcmp.eq.s32.totalorder %v2571_v5, %v2819_v54  ;;  %vm717_vm0 = vcmp.eq.s32.totalorder %v2571_v5, %v2822_v55  ;;  %v912_v31 = vadd.f32 %v909_v17, %v908_v27  ;;  %v943_v32 = vadd.f32 %v940_v18, %v939_v28 }
 0x1d0   : > { %vm3738_vm1 = vcmp.eq.s32.totalorder %v2787_v52, %v2753_v41  ;;  %vm3739_vm2 = vcmp.eq.s32.totalorder %v2787_v52, %v2760_v44  ;;  %v566_v38 = vsel %vm562_vm9, %v2164_v29, 0.0  ;;  %vm3740_vm3 = vcmp.eq.s32.totalorder %v2787_v52, %v2767_v46 }
 0x1d1   : > { %v501_v33 = vsel %vm3738_vm1, %v2164_v29, 0.0  ;;  %v533_v35 = vsel %vm3739_vm2, %v2164_v29, 0.0  ;;  %v881_v43 = vsel %vm3740_vm3, %v2184_v30, 0.0  ;;  %vm3741_vm4 = vcmp.eq.s32.totalorder %v2787_v52, %v2770_v47  ;;  %v2171_v19 = vpop.f32.mrb[4].mxu1  ;;  %v2201_v20 = vpop.f32.mrb[8].mxu0 }
 0x1d2   : > { %v911_v3 = vsel %vm3741_vm4, %v2184_v30, 0.0  ;;  %vm3742_vm13 = vcmp.eq.s32.totalorder %v2787_v52, %v2774_v48  ;;  %vm3743_vm14 = vcmp.eq.s32.totalorder %v2804_v53, %v2753_v41  ;;  %vm3744_vm1 = vcmp.eq.s32.totalorder %v2804_v53, %v2760_v44 }
 0x1d3   : > { %v942_v4 = vsel %vm3742_vm13, %v2184_v30, 0.0  ;;  %v500_v11 = vsel %vm3743_vm14, %v481_v36, 0.0  ;;  %v532_v12 = vsel %vm3744_vm1, %v481_v36, 0.0  ;;  %vm3745_vm9 = vcmp.eq.s32.totalorder %v2804_v53, %v2764_v45 }
 0x1d4   : > { %v565_v13 = vsel %vm3745_vm9, %v481_v36, 0.0  ;;  %v880_v14 = vsel %vm876_vm6, %v861_v37, 0.0  ;;  %v503_v15 = vadd.f32 %v502_v21, %v500_v11  ;;  %v535_v16 = vadd.f32 %v534_v22, %v532_v12  ;;  %v664_v21 = vpop.f32.mrb[5].mxu1  ;;  %v2992_v22 = vpop.f32.mrb[9].mxu0 }
 0x1d5   : > { %v568_v17 = vadd.f32 %v567_v25, %v565_v13  ;;  %v883_v18 = vadd.f32 %v882_v26, %v880_v14  ;;  %vm748_vm2 = vcmp.eq.s32.totalorder %v2571_v5, %v2838_v56  ;;  %vm1248_vm3 = vcmp.eq.s32.totalorder %v2571_v5, %v2841_v57 }
 0x1d6   : > { %v910_v41 = vsel %vm906_vm5, %v861_v37, 0.0  ;;  %v941_v44 = vsel %vm937_vm8, %v861_v37, 0.0  ;;  %vm3746_vm6 = vcmp.eq.s32.totalorder %v2584_v8, %v2819_v54  ;;  %vm3747_vm4 = vcmp.eq.s32.totalorder %v2584_v8, %v2822_v55 }
 0x1d7   : > { %v692_v45 = vsel %vm3746_vm6, %v2171_v19, 0.0  ;;  %v722_v46 = vsel %vm3747_vm4, %v2171_v19, 0.0  ;;  %v504_v23 = vadd.f32 %v503_v15, %v501_v33  ;;  %v536_v24 = vadd.f32 %v535_v16, %v533_v35 }
 0x1d8   : > { %v569_v25 = vadd.f32 %v568_v17, %v566_v38  ;;  %v884_v47 = vadd.f32 %v883_v18, %v881_v43  ;;  %v913_v26 = vadd.f32 %v912_v31, %v910_v41  ;;  %v944_v27 = vadd.f32 %v943_v32, %v941_v44  ;;  %v3004_v31 = vpop.f32.mrb[6].mxu1  ;;  %v3006_v32 = vpop.f32.mrb[10].mxu0 }
 0x1d9   : > { %v753_v48 = vsel %vm749_vm10, %v2171_v19, 0.0  ;;  %v1253_v28 = vsel %vm1249_vm7, %v2201_v20, 0.0  ;;  %v505_v29 = vrot.slane %v504_v23, 4  ;;  %v537_v30 = vrot.slane %v536_v24, 4  ;;  %v3018_v11 = vpop.f32.mrb[7].mxu1  ;;  %v3020_v12 = vpop.f32.mrb[11].mxu0 }
 0x1da   : > { %v570_v36 = vrot.slane %v569_v25, 4  ;;  %v885_v37 = vrot.slane %v884_v47, 4  ;;  %vm1278_vm5 = vcmp.eq.s32.totalorder %v2571_v5, %v2848_v58  ;;  %vm1309_vm8 = vcmp.eq.s32.totalorder %v2571_v5, %v2852_v59 }
 0x1db   : > { %v914_v33 = vadd.f32 %v913_v26, %v911_v3  ;;  %v945_v35 = vadd.f32 %v944_v27, %v942_v4  ;;  %v3011_v38 = vsel %vm1279_vm11, %v2201_v20, 0.0  ;;  %v3016_v43 = vsel %vm1310_vm12, %v2201_v20, 0.0 }
 0x1dc   : > { %v506_v13 = vadd.f32 %v505_v29, %v504_v23  ;;  %v538_v14 = vadd.f32 %v537_v30, %v536_v24  ;;  %v571_v15 = vadd.f32 %v570_v36, %v569_v25  ;;  %v886_v16 = vadd.f32 %v885_v37, %v884_v47  ;;  %v3030_v23 = vpop.f32.mrb[8].mxu1  ;;  %v3032_v24 = vpop.f32.mrb[12].mxu0 }
 0x1dd   : > { %v915_v3 = vrot.slane %v914_v33, 4  ;;  %v946_v4 = vrot.slane %v945_v35, 4  ;;  %v691_v17 = vsel %vm687_vm15, %v664_v21, 0.0  ;;  %v721_v18 = vsel %vm717_vm0, %v664_v21, 0.0  ;;  %v3044_v29 = vpop.f32.mrb[9].mxu1  ;;  %v3046_v30 = vpop.f32.mrb[13].mxu0 }
 0x1de   : > { %v507_v19 = vrot.slane %v506_v13, 2  ;;  %v539_v20 = vrot.slane %v538_v14, 2  ;;  %v572_v41 = vrot.slane %v571_v15, 2  ;;  %v887_v44 = vrot.slane %v886_v16, 2 }
 0x1df   : > { %vm690_vm7 = vcmp.eq.s32.totalorder %v2787_v52, %v2819_v54  ;;  %v916_v25 = vadd.f32 %v915_v3, %v914_v33  ;;  %v947_v47 = vadd.f32 %v946_v4, %v945_v35  ;;  %v3034_v26 = vadd.f32 %v692_v45, %v691_v17  ;;  %v3067_v17 = vpop.f32.mrb[14].mxu0 }
 0x1e0   : > { %v3036_v27 = vadd.f32 %v722_v46, %v721_v18  ;;  %vm720_vm10 = vcmp.eq.s32.totalorder %v2787_v52, %v2822_v55  ;;  %vm751_vm11 = vcmp.eq.s32.totalorder %v2787_v52, %v2838_v56  ;;  %vm1251_vm12 = vcmp.eq.s32.totalorder %v2787_v52, %v2841_v57  ;;  %3749 = vst [vmem:[#allocation10_spill] sm:$0xff] %v3067_v17  ;;  %v3077_v10 = vpop.f32.mrb[15].mxu0 }
 0x1e1   : > { %v508_v36 = vadd.f32 %v507_v19, %v506_v13  ;;  %v540_v37 = vadd.f32 %v539_v20, %v538_v14  ;;  %v573_v33 = vadd.f32 %v572_v41, %v571_v15  ;;  %v888_v45 = vadd.f32 %v887_v44, %v886_v16 }
 0x1e2   : > { %vm1281_vm15 = vcmp.eq.s32.totalorder %v2787_v52, %v2848_v58  ;;  %v917_v46 = vrot.slane %v916_v25, 2  ;;  %v948_v35 = vrot.slane %v947_v47, 2  ;;  %v752_v3 = vsel %vm748_vm2, %v664_v21, 0.0  ;;  %v3065_v21 = vpop.f32.mrb[10].mxu1 }
 0x1e3   : > { %v1252_v4 = vsel %vm1248_vm3, %v2992_v22, 0.0  ;;  %vm1312_vm0 = vcmp.eq.s32.totalorder %v2787_v52, %v2852_v59  ;;  %vm689_vm13 = vcmp.eq.s32.totalorder %v2804_v53, %v2819_v54  ;;  %vm719_vm14 = vcmp.eq.s32.totalorder %v2804_v53, %v2822_v55  ;;  %3748 = vst [vmem:[#allocation9_spill] sm:$0xff] %v3065_v21  ;;  %v3075_v44 = vpop.f32.mrb[11].mxu1 }
 0x1e4   : > { %v509_v13 = vrot.slane %v508_v36, 1  ;;  %v541_v14 = vrot.slane %v540_v37, 1  ;;  %v574_v15 = vrot.slane %v573_v33, 1  ;;  %v889_v16 = vrot.slane %v888_v45, 1 }
 0x1e5   : > { %vm750_vm1 = vcmp.eq.s32.totalorder %v2804_v53, %v2838_v56  ;;  %v918_v18 = vadd.f32 %v917_v46, %v916_v25  ;;  %v949_v19 = vadd.f32 %v948_v35, %v947_v47  ;;  %v756_v20 = vadd.f32 %v753_v48, %v752_v3 }
 0x1e6   : > { %v3069_v41 = vadd.f32 %v1253_v28, %v1252_v4  ;;  %vm1250_vm9 = vcmp.eq.s32.totalorder %v2804_v53, %v2841_v57  ;;  %vm1280_vm2 = vcmp.eq.s32.totalorder %v2804_v53, %v2848_v58  ;;  %v510_v9 = vadd.f32 %v509_v13, %v508_v36 }
 0x1e7   : > { %v542_v7 = vadd.f32 %v541_v14, %v540_v37  ;;  %v575_v6 = vadd.f32 %v574_v15, %v573_v33  ;;  %v890_v21 = vadd.f32 %v889_v16, %v888_v45  ;;  %v919_v17 = vrot.slane %v918_v18, 1  ;;  %v3095_v45 = vpop.f32.mrb[12].mxu1 }
 0x1e8   : > { %v950_v25 = vrot.slane %v949_v19, 1  ;;  %v1282_v48 = vsel %vm1278_vm5, %v2992_v22, 0.0  ;;  %v1313_v28 = vsel %vm1309_vm8, %v2992_v22, 0.0  ;;  %vm1311_vm3 = vcmp.eq.s32.totalorder %v2804_v53, %v2852_v59 }
 0x1e9   : > { %vm1062_vm6 = vcmp.eq.s32.totalorder %v2584_v8, %v2863_v60  ;;  %v512_v47 = vmul.f32 %v2777_v49, %v510_v9  ;;  %v544_v36 = vmul.f32 %v2780_v50, %v542_v7  ;;  %v577_v37 = vmul.f32 %v2782_v51, %v575_v6  ;;  %v3103_v9 = vpop.f32.mrb[13].mxu1 }
 0x1ea   : > { %v891_v33 = vmul.f32 %v890_v21, %v2777_v49  ;;  %v920_v46 = vadd.f32 %v919_v17, %v918_v18  ;;  %v951_v35 = vadd.f32 %v950_v25, %v949_v19  ;;  %v1286_v22 = vadd.f32 %v3011_v38, %v1282_v48  ;;  %v3131_v21 = vpop.f32.mrb[14].mxu1 }
 0x1eb   : > { %v1317_v3 = vadd.f32 %v3016_v43, %v1313_v28  ;;  %vm1092_vm4 = vcmp.eq.s32.totalorder %v2584_v8, %v2866_v61  ;;  %v513_v7 = vmul.f32 1.442695, %v512_v47  ;;  %v545_v6 = vmul.f32 1.442695, %v544_v36  ;;  %v3137_v25 = vpop.f32.mrb[15].mxu1 }
 0x1ec   : > { %v578_v4 = vmul.f32 1.442695, %v577_v37  ;;  %v3107_v13 = vrot.slane %v2747_v39, %v2688_v34  ;;  %v892_v14 = vmul.f32 1.442695, %v891_v33  ;;  %v921_v38 = vmul.f32 %v920_v46, %v2780_v50 }
 0x1ed   : > { %v952_v43 = vmul.f32 %v951_v35, %v2782_v51  ;;  %v694_v15 = vsel %vm690_vm7, %v3004_v31, 0.0  ;;  %vm1623_vm8 = vcmp.eq.s32.totalorder %v2584_v8, %v2873_v63  ;;  %vm1653_vm5 = vcmp.eq.s32.totalorder %v2584_v8, %v2876_v0 }
 0x1ee   : > { %2314 = vpow2.f32 %v513_v7  ;;  %v724_v34 = vsel %vm720_vm10, %v3004_v31, 0.0  ;;  %v755_v39 = vsel %vm751_vm11, %v3004_v31, 0.0  ;;  %v1255_v16 = vsel %vm1251_vm12, %v3006_v32, 0.0 }
 0x1ef   : > { %2316 = vpow2.f32 %v545_v6  ;;  %v922_v17 = vmul.f32 1.442695, %v921_v38  ;;  %v953_v18 = vmul.f32 1.442695, %v952_v43  ;;  %v1285_v19 = vsel %vm1281_vm15, %v3006_v32, 0.0 }
 0x1f0   : > { %2318 = vpow2.f32 %v578_v4  ;;  %v1316_v31 = vsel %vm1312_vm0, %v3006_v32, 0.0  ;;  %v693_v48 = vsel %vm689_vm13, %v3018_v11, 0.0  ;;  %v723_v28 = vsel %vm719_vm14, %v3018_v11, 0.0 }
 0x1f1   : > { %2320 = vpow2.f32 %v892_v14  ;;  %v696_v47 = vadd.f32 %v3034_v26, %v693_v48  ;;  %v726_v36 = vadd.f32 %v3036_v27, %v723_v28  ;;  %v754_v32 = vsel %vm750_vm1, %v3018_v11, 0.0  ;;  %v3165_v26 = vpop.f32.mrb[16].mxu1 }
 0x1f2   : > { %2322 = vpow2.f32 %v922_v17  ;;  %v757_v37 = vadd.f32 %v756_v20, %v754_v32  ;;  %v1254_v54 = vsel %vm1250_vm9, %v3020_v12, 0.0  ;;  %v1284_v55 = vsel %vm1280_vm2, %v3020_v12, 0.0  ;;  %v3168_v11 = vpop.f32.mrb[17].mxu1 }
 0x1f3   : > { %2324 = vpow2.f32 %v953_v18  ;;  %v697_v27 = vadd.f32 %v696_v47, %v694_v15  ;;  %v727_v33 = vadd.f32 %v726_v36, %v724_v34  ;;  %v1257_v56 = vadd.f32 %v3069_v41, %v1254_v54 }
 0x1f4   : > { %v758_v20 = vadd.f32 %v757_v37, %v755_v39  ;;  %v1287_v46 = vadd.f32 %v1286_v22, %v1284_v55  ;;  %v1315_v57 = vsel %vm1311_vm3, %v3020_v12, 0.0  ;;  %v3178_v58 = vsel %vm1062_vm6, %v3030_v23, 0.0  ;;  %v3194_v12 = vpop.f32.mrb[18].mxu1 }
 0x1f5   : > { %v698_v35 = vrot.slane %v697_v27, 4  ;;  %v728_v7 = vrot.slane %v727_v33, 4  ;;  %v1258_v6 = vadd.f32 %v1257_v56, %v1255_v16  ;;  %v1318_v4 = vadd.f32 %v1317_v3, %v1315_v57  ;;  %v3198_v34 = vpop.f32.mrb[19].mxu1 }
 0x1f6   : > { %v759_v41 = vrot.slane %v758_v20, 4  ;;  %v1288_v14 = vadd.f32 %v1287_v46, %v1285_v19  ;;  %v3184_v22 = vsel %vm1092_vm4, %v3030_v23, 0.0  ;;  %vm3750_vm7 = vcmp.eq.s32.totalorder %v2584_v8, %v2870_v62 }
 0x1f7   : > { %v3190_v59 = vsel %vm3750_vm7, %v3030_v23, 0.0  ;;  %vm1684_vm10 = vcmp.eq.s32.totalorder %v2584_v8, %v2880_v1  ;;  %v699_v3 = vadd.f32 %v698_v35, %v697_v27  ;;  %v729_v38 = vadd.f32 %v728_v7, %v727_v33 }
 0x1f8   : > { %v1259_v43 = vrot.slane %v1258_v6, 4  ;;  %v1319_v15 = vadd.f32 %v1318_v4, %v1316_v31  ;;  %vm1061_vm11 = vcmp.eq.s32.totalorder %v2571_v5, %v2863_v60  ;;  %v2315_v39 = vpop.eup %2314  ;;  %v760_v16 = vadd.f32 %v759_v41, %v758_v20 }
 0x1f9   : > { %v1289_v17 = vrot.slane %v1288_v14, 4  ;;  %v3204_v23 = vsel %vm1623_vm8, %v3032_v24, 0.0  ;;  %v3210_v18 = vsel %vm1653_vm5, %v3032_v24, 0.0  ;;  %v2317_v19 = vpop.eup %2316  ;;  %v3212_v31 = vadd.f32 1.0, %v2315_v39 }
 0x1fa   : > { %v700_v48 = vrot.slane %v699_v3, 2  ;;  %v730_v28 = vrot.slane %v729_v38, 2  ;;  %v1260_v47 = vadd.f32 %v1259_v43, %v1258_v6  ;;  %vm1091_vm12 = vcmp.eq.s32.totalorder %v2571_v5, %v2866_v61  ;;  %v2319_v36 = vpop.eup %2318 }
 0x1fb   : > { %v3216_v32 = vadd.f32 1.0, %v2317_v19  ;;  %v761_v37 = vrot.slane %v760_v16, 2  ;;  %v1290_v54 = vadd.f32 %v1289_v17, %v1288_v14  ;;  %v1320_v55 = vrot.slane %v1319_v15, 4  ;;  %v2321_v27 = vpop.eup %2320 }
 0x1fc   : > { %vm1122_vm15 = vcmp.eq.s32.totalorder %v2571_v5, %v2870_v62  ;;  %2326 = vrcp.f32 %v3212_v31  ;;  %v3221_v33 = vadd.f32 1.0, %v2319_v36  ;;  %v701_v56 = vadd.f32 %v700_v48, %v699_v3  ;;  %v2323_v46 = vpop.eup %2322 }
 0x1fd   : > { %v731_v20 = vadd.f32 %v730_v28, %v729_v38  ;;  %2328 = vrcp.f32 %v3216_v32  ;;  %v3224_v57 = vadd.f32 1.0, %v2321_v27  ;;  %v762_v35 = vadd.f32 %v761_v37, %v760_v16  ;;  %v2325_v6 = vpop.eup %2324 }
 0x1fe   : > { %v1261_v7 = vrot.slane %v1260_v47, 2  ;;  %2330 = vrcp.f32 %v3221_v33  ;;  %v3227_v4 = vadd.f32 1.0, %v2323_v46  ;;  %v702_v41 = vrot.slane %v701_v56, 1 }
 0x1ff   : > { %v732_v14 = vrot.slane %v731_v20, 1  ;;  %2332 = vrcp.f32 %v3224_v57  ;;  %v3230_v43 = vadd.f32 1.0, %v2325_v6  ;;  %v763_v3 = vrot.slane %v762_v35, 1 }
 0x200   : > { %v1262_v38 = vadd.f32 %v1261_v7, %v1260_v47  ;;  %vm1622_vm0 = vcmp.eq.s32.totalorder %v2571_v5, %v2873_v63  ;;  %2334 = vrcp.f32 %v3227_v4  ;;  %v703_v39 = vadd.f32 %v702_v41, %v701_v56 }
 0x201   : > { %v733_v16 = vadd.f32 %v732_v14, %v731_v20  ;;  %v1291_v17 = vrot.slane %v1290_v54, 2  ;;  %2336 = vrcp.f32 %v3230_v43  ;;  %v764_v19 = vadd.f32 %v763_v3, %v762_v35 }
 0x202   : > { %v1263_v48 = vrot.slane %v1262_v38, 1  ;;  %v1321_v28 = vadd.f32 %v1320_v55, %v1319_v15  ;;  %vm3718_vm13 = vcmp.eq.f32.partialorder %v2750_v40, 0.0  ;;  %v704_v36 = vmul.f32 %v703_v39, %v2777_v49 }
 0x203   : > { %v734_v37 = vmul.f32 %v733_v16, %v2780_v50  ;;  %v1292_v47 = vadd.f32 %v1291_v17, %v1290_v54  ;;  %v3243_v27 = vsel %vm1684_vm10, %v3032_v24, 0.0  ;;  %vm3719_vm14 = vcmp.eq.f32.partialorder %v2756_v42, 0.0 }
 0x204   : > { %v765_v56 = vmul.f32 %v764_v19, %v2782_v51  ;;  %v1264_v20 = vadd.f32 %v1263_v48, %v1262_v38  ;;  %v1322_v46 = vrot.slane %v1321_v28, 2  ;;  %v1065_v15 = vsel %vm1061_vm11, %v3044_v29, 0.0 }
 0x205   : > { %v705_v55 = vmul.f32 1.442695, %v704_v36  ;;  %v735_v35 = vmul.f32 1.442695, %v734_v37  ;;  %v1293_v54 = vrot.slane %v1292_v47, 1  ;;  %v3252_v7 = vadd.f32 %v3178_v58, %v1065_v15 }
 0x206   : > { %vm1652_vm1 = vcmp.eq.s32.totalorder %v2571_v5, %v2876_v0  ;;  %vm1683_vm9 = vcmp.eq.s32.totalorder %v2571_v5, %v2880_v1  ;;  %v766_v24 = vmul.f32 1.442695, %v765_v56  ;;  %v1265_v6 = vmul.f32 %v1264_v20, %v2777_v49  ;;  %v2327_v58 = vpop.eup %2326 }
 0x207   : > { %v1323_v41 = vadd.f32 %v1322_v46, %v1321_v28  ;;  %v1095_v14 = vsel %vm1091_vm12, %v3044_v29, 0.0  ;;  %vm1064_vm2 = vcmp.eq.s32.totalorder %v2787_v52, %v2863_v60  ;;  %2338 = vpow2.f32 %v705_v55  ;;  %v2329_v16 = vpop.eup %2328 }
 0x208   : > { %v1294_v3 = vadd.f32 %v1293_v54, %v1292_v47  ;;  %v3266_v38 = vadd.f32 %v3184_v22, %v1095_v14  ;;  %v1126_v39 = vsel %vm1122_vm15, %v3044_v29, 0.0  ;;  %vm1094_vm3 = vcmp.eq.s32.totalorder %v2787_v52, %v2866_v61  ;;  %v2331_v29 = vpop.eup %2330 }
 0x209   : > { %vm1125_vm6 = vcmp.eq.s32.totalorder %v2787_v52, %v2870_v62  ;;  %vm1625_vm4 = vcmp.eq.s32.totalorder %v2787_v52, %v2873_v63  ;;  %v517_v17 = vmul.f32 %v2327_v58, %v3212_v31  ;;  %2340 = vpow2.f32 %v735_v35  ;;  %v2333_v36 = vpop.eup %2332 }
 0x20a   : > { %v1266_v22 = vmul.f32 1.442695, %v1265_v6  ;;  %v1324_v19 = vrot.slane %v1323_v41, 1  ;;  %vm1655_vm5 = vcmp.eq.s32.totalorder %v2787_v52, %v2876_v0  ;;  %vm1686_vm8 = vcmp.eq.s32.totalorder %v2787_v52, %v2880_v1  ;;  %v2335_v20 = vpop.eup %2334 }
 0x20b   : > { %vm1063_vm7 = vcmp.eq.s32.totalorder %v2804_v53, %v2863_v60  ;;  %v549_v48 = vmul.f32 %v2329_v16, %v3216_v32  ;;  %2342 = vpow2.f32 %v766_v24  ;;  %v1295_v28 = vmul.f32 %v1294_v3, %v2780_v50  ;;  %v2337_v55 = vpop.eup %2336 }
 0x20c   : > { %v3288_v31 = vadd.f32 %v3190_v59, %v1126_v39  ;;  %vm1093_vm10 = vcmp.eq.s32.totalorder %v2804_v53, %v2866_v61  ;;  %v518_v37 = vsub.f32 2.0, %v517_v17  ;;  %v582_v47 = vmul.f32 %v2331_v29, %v3221_v33 }
 0x20d   : > { %2344 = vpow2.f32 %v1266_v22  ;;  %v1325_v56 = vadd.f32 %v1324_v19, %v1323_v41  ;;  %vm1124_vm11 = vcmp.eq.s32.totalorder %v2804_v53, %v2870_v62  ;;  %v550_v32 = vsub.f32 2.0, %v549_v48 }
 0x20e   : > { %v896_v46 = vmul.f32 %v2333_v36, %v3224_v57  ;;  %v1296_v15 = vmul.f32 1.442695, %v1295_v28  ;;  %v1626_v59 = vsel %vm1622_vm0, %v3046_v30, 0.0  ;;  %v519_v33 = vmul.f32 %v2327_v58, %v518_v37  ;;  %v3751_v37 = vld [vmem:[#allocation9_spill] sm:$0xff] }
 0x20f   : > { %v583_v35 = vsub.f32 2.0, %v582_v47  ;;  %v926_v54 = vmul.f32 %v2335_v20, %v3227_v4  ;;  %v1326_v24 = vmul.f32 %v1325_v56, %v2782_v51  ;;  %vm1654_vm15 = vcmp.eq.s32.totalorder %v2804_v53, %v2876_v0  ;;  %v3752_v56 = vld [vmem:[#allocation5_spill] sm:$0xff] }
 0x210   : > { %v551_v57 = vmul.f32 %v2329_v16, %v550_v32  ;;  %v897_v6 = vsub.f32 2.0, %v896_v46  ;;  %v957_v41 = vmul.f32 %v2337_v55, %v3230_v43  ;;  %2346 = vpow2.f32 %v1296_v15 }
 0x211   : > { %v3309_v14 = vsel %vm3718_vm13, 1.0, %v519_v33  ;;  %v3311_v3 = vmul.f32 %v2331_v29, %v583_v35  ;;  %v927_v58 = vsub.f32 2.0, %v926_v54  ;;  %v1327_v39 = vmul.f32 1.442695, %v1326_v24  ;;  %v2339_v48 = vpop.eup %2338  ;;  %v3754_v54 = vld [vmem:[#allocation6_spill] sm:$0xff] }
 0x212   : > { %vm1685_vm0 = vcmp.eq.s32.totalorder %v2804_v53, %v2880_v1  ;;  %vm1436_vm12 = vcmp.eq.s32.totalorder %v2584_v8, %v2883_v2  ;;  %v3319_v4 = vsel %vm3719_vm14, 1.0, %v551_v57  ;;  %v3321_v43 = vmul.f32 %v2333_v36, %v897_v6 }
 0x213   : > { %v958_v16 = vsub.f32 2.0, %v957_v41  ;;  %v1630_v17 = vadd.f32 %v3204_v23, %v1626_v59  ;;  %v3324_v22 = vmul.f32 %v2335_v20, %v927_v58  ;;  %2348 = vpow2.f32 %v1327_v39  ;;  %v2341_v20 = vpop.eup %2340 }
 0x214   : > { %v1656_v19 = vsel %vm1652_vm1, %v3046_v30, 0.0  ;;  %v1687_v29 = vsel %vm1683_vm9, %v3046_v30, 0.0  ;;  %v1068_v47 = vsel %vm1064_vm2, %v3751_v37, 0.0  ;;  %vm1466_vm1 = vcmp.eq.s32.totalorder %v2584_v8, %v3752_v56 }
 0x215   : > { %v3334_v28 = vmul.f32 %v2337_v55, %v958_v16  ;;  %v1660_v36 = vadd.f32 %v3210_v18, %v1656_v19  ;;  %v1691_v23 = vadd.f32 %v3243_v27, %v1687_v29  ;;  %v707_v32 = vadd.f32 1.0, %v2339_v48  ;;  %v3753_v27 = vld [vmem:[#allocation10_spill] sm:$0xff]  ;;  %v2343_v15 = vpop.eup %2342 }
 0x216   : > { %v1098_v30 = vsel %vm1094_vm3, %v3751_v37, 0.0  ;;  %v1129_v18 = vsel %vm1125_vm6, %v3751_v37, 0.0  ;;  %v1629_v46 = vsel %vm1625_vm4, %v3753_v27, 0.0  ;;  %v737_v59 = vadd.f32 1.0, %v2341_v20 }
 0x217   : > { %v1659_v55 = vsel %vm1655_vm5, %v3753_v27, 0.0  ;;  %v1690_v33 = vsel %vm1686_vm8, %v3753_v27, 0.0  ;;  %v1067_v35 = vsel %vm1063_vm7, %v3075_v44, 0.0  ;;  %vm1497_vm9 = vcmp.eq.s32.totalorder %v2584_v8, %v3754_v54  ;;  %v2345_v24 = vpop.eup %2344 }
 0x218   : > { %2350 = vrcp.f32 %v707_v32  ;;  %v768_v57 = vadd.f32 1.0, %v2343_v15  ;;  %v1070_v6 = vadd.f32 %v3252_v7, %v1067_v35  ;;  %v1097_v41 = vsel %vm1093_vm10, %v3075_v44, 0.0 }
 0x219   : > { %2352 = vrcp.f32 %v737_v59  ;;  %v3375_v58 = vadd.f32 1.0, %v2345_v24  ;;  %v1100_v39 = vadd.f32 %v3266_v38, %v1097_v41  ;;  %v1128_v60 = vsel %vm1124_vm11, %v3075_v44, 0.0 }
 0x21a   : > { %2354 = vrcp.f32 %v768_v57  ;;  %v1071_v16 = vadd.f32 %v1070_v6, %v1068_v47  ;;  %v1131_v19 = vadd.f32 %v3288_v31, %v1128_v60  ;;  %vm3755_vm2 = vcmp.eq.s32.totalorder %v2804_v53, %v2873_v63  ;;  %v2347_v7 = vpop.eup %2346 }
 0x21b   : > { %v1628_v61 = vsel %vm3755_vm2, %v3077_v10, 0.0  ;;  %2356 = vrcp.f32 %v3375_v58  ;;  %v1101_v29 = vadd.f32 %v1100_v39, %v1098_v30  ;;  %v1658_v62 = vsel %vm1654_vm15, %v3077_v10, 0.0 }
 0x21c   : > { %v1631_v48 = vadd.f32 %v1630_v17, %v1628_v61  ;;  %v3392_v44 = vadd.f32 1.0, %v2347_v7  ;;  %v1072_v38 = vrot.slane %v1071_v16, 4  ;;  %v1132_v37 = vadd.f32 %v1131_v19, %v1129_v18 }
 0x21d   : > { %v1661_v31 = vadd.f32 %v1660_v36, %v1658_v62  ;;  %v1102_v47 = vrot.slane %v1101_v29, 4  ;;  %v1689_v63 = vsel %vm1685_vm0, %v3077_v10, 0.0  ;;  %v3402_v17 = vsel %vm1436_vm12, %v3095_v45, 0.0  ;;  %v2349_v0 = vpop.eup %2348 }
 0x21e   : > { %v1632_v20 = vadd.f32 %v1631_v48, %v1629_v46  ;;  %2358 = vrcp.f32 %v3392_v44  ;;  %v1073_v30 = vadd.f32 %v1072_v38, %v1071_v16  ;;  %v1133_v27 = vrot.slane %v1132_v37, 4 }
 0x21f   : > { %v1662_v18 = vadd.f32 %v1661_v31, %v1659_v55  ;;  %v3405_v36 = vadd.f32 1.0, %v2349_v0  ;;  %v1103_v46 = vadd.f32 %v1102_v47, %v1101_v29  ;;  %v1692_v35 = vadd.f32 %v1691_v23, %v1689_v63 }
 0x220   : > { %v1633_v15 = vrot.slane %v1632_v20, 4  ;;  %v1074_v24 = vrot.slane %v1073_v30, 2  ;;  %v1134_v1 = vadd.f32 %v1133_v27, %v1132_v37  ;;  %v3411_v6 = vsel %vm1466_vm1, %v3095_v45, 0.0 }
 0x221   : > { %v1663_v10 = vrot.slane %v1662_v18, 4  ;;  %2360 = vrcp.f32 %v3405_v36  ;;  %v1104_v41 = vrot.slane %v1103_v46, 2  ;;  %v1693_v60 = vadd.f32 %v1692_v35, %v1690_v33 }
 0x222   : > { %v1634_v39 = vadd.f32 %v1633_v15, %v1632_v20  ;;  %v2351_v55 = vpop.eup %2350  ;;  %v1075_v16 = vadd.f32 %v1074_v24, %v1073_v30  ;;  %v1135_v19 = vrot.slane %v1134_v1, 2  ;;  %v3418_v23 = vsel %vm1497_vm9, %v3095_v45, 0.0 }
 0x223   : > { %v1664_v61 = vadd.f32 %v1663_v10, %v1662_v18  ;;  %vm1435_vm3 = vcmp.eq.s32.totalorder %v2571_v5, %v2883_v2  ;;  %v2353_v7 = vpop.eup %2352  ;;  %v709_v29 = vmul.f32 %v2351_v55, %v707_v32  ;;  %v1105_v48 = vadd.f32 %v1104_v41, %v1103_v46 }
 0x224   : > { %v1635_v62 = vrot.slane %v1634_v39, 2  ;;  %v1694_v38 = vrot.slane %v1693_v60, 4  ;;  %vm1465_vm6 = vcmp.eq.s32.totalorder %v2571_v5, %v3752_v56  ;;  %v2355_v33 = vpop.eup %2354  ;;  %v739_v37 = vmul.f32 %v2353_v7, %v737_v59 }
 0x225   : > { %v1076_v31 = vrot.slane %v1075_v16, 1  ;;  %v1136_v47 = vadd.f32 %v1135_v19, %v1134_v1  ;;  %v1665_v20 = vrot.slane %v1664_v61, 2  ;;  %vm1496_vm4 = vcmp.eq.s32.totalorder %v2571_v5, %v3754_v54  ;;  %v3426_v45 = vpop.eup %2356 }
 0x226   : > { %v710_v63 = vsub.f32 2.0, %v709_v29  ;;  %v770_v0 = vmul.f32 %v2355_v33, %v768_v57  ;;  %v1106_v30 = vrot.slane %v1105_v48, 1  ;;  %v1636_v32 = vadd.f32 %v1635_v62, %v1634_v39  ;;  %v3757_v62 = vld [vmem:[#allocation8_spill] sm:$0xff] }
 0x227   : > { %vm1438_vm5 = vcmp.eq.s32.totalorder %v2787_v52, %v2883_v2  ;;  %vm1468_vm8 = vcmp.eq.s32.totalorder %v2787_v52, %v3752_v56  ;;  %v740_v27 = vsub.f32 2.0, %v739_v37  ;;  %v3434_v59 = vmul.f32 %v3426_v45, %v3375_v58  ;;  %v3756_v58 = vld [vmem:[#allocation7_spill] sm:$0xff] }
 0x228   : > { %v1077_v18 = vadd.f32 %v1076_v31, %v1075_v16  ;;  %v1137_v46 = vrot.slane %v1136_v47, 1  ;;  %vm1499_vm7 = vcmp.eq.s32.totalorder %v2787_v52, %v3754_v54  ;;  %vm1437_vm10 = vcmp.eq.s32.totalorder %v2804_v53, %v2883_v2  ;;  %v3446_v1 = vpop.eup %2358 }
 0x229   : > { %v711_v57 = vmul.f32 %v2351_v55, %v710_v63  ;;  %v771_v15 = vsub.f32 2.0, %v770_v0  ;;  %v1107_v35 = vadd.f32 %v1106_v30, %v1105_v48  ;;  %v1637_v24 = vrot.slane %v1636_v32, 1 }
 0x22a   : > { %vm1467_vm11 = vcmp.eq.s32.totalorder %v2804_v53, %v3752_v56  ;;  %vm1498_vm12 = vcmp.eq.s32.totalorder %v2804_v53, %v3754_v54  ;;  %vm1810_vm15 = vcmp.eq.s32.totalorder %v2584_v8, %v3756_v58  ;;  %v741_v10 = vmul.f32 %v2353_v7, %v740_v27 }
 0x22b   : > { %v1271_v41 = vsub.f32 2.0, %v3434_v59  ;;  %v1078_v39 = vmul.f32 %v1077_v18, %v2777_v49  ;;  %v1138_v55 = vadd.f32 %v1137_v46, %v1136_v47  ;;  %v3452_v16 = vsel %vm3718_vm13, 1.0, %v711_v57  ;;  %v3472_v31 = vpop.eup %2360 }
 0x22c   : > { %v3454_v19 = vmul.f32 %v2355_v33, %v771_v15  ;;  %v3458_v29 = vmul.f32 %v3446_v1, %v3392_v44  ;;  %v1108_v48 = vmul.f32 %v1107_v35, %v2780_v50  ;;  %vm1840_vm0 = vcmp.eq.s32.totalorder %v2584_v8, %v3757_v62 }
 0x22d   : > { %vm1871_vm1 = vcmp.eq.s32.totalorder %v2584_v8, %v3107_v13  ;;  %vm1809_vm9 = vcmp.eq.s32.totalorder %v2571_v5, %v3756_v58  ;;  %v3469_v7 = vsel %vm3719_vm14, 1.0, %v741_v10  ;;  %v1079_v33 = vmul.f32 1.442695, %v1078_v39 }
 0x22e   : > { %v1139_v37 = vmul.f32 %v1138_v55, %v2782_v51  ;;  %v1638_v44 = vadd.f32 %v1637_v24, %v1636_v32  ;;  %v1301_v47 = vsub.f32 2.0, %v3458_v29  ;;  %v1109_v63 = vmul.f32 1.442695, %v1108_v48 }
 0x22f   : > { %v1666_v0 = vadd.f32 %v1665_v20, %v1664_v61  ;;  %v1695_v30 = vadd.f32 %v1694_v38, %v1693_v60  ;;  %vm1839_vm2 = vcmp.eq.s32.totalorder %v2571_v5, %v3757_v62  ;;  %vm1870_vm13 = vcmp.eq.s32.totalorder %v2571_v5, %v3107_v13 }
 0x230   : > { %v3481_v27 = vmul.f32 %v3472_v31, %v3405_v36  ;;  %2362 = vpow2.f32 %v1079_v33  ;;  %v1140_v18 = vmul.f32 1.442695, %v1139_v37  ;;  %v1639_v32 = vmul.f32 %v1638_v44, %v2777_v49 }
 0x231   : > { %2364 = vpow2.f32 %v1109_v63  ;;  %v1667_v46 = vrot.slane %v1666_v0, 1  ;;  %v1696_v57 = vrot.slane %v1695_v30, 2  ;;  %v1439_v60 = vsel %vm1435_vm3, %v3103_v9, 0.0 }
 0x232   : > { %2366 = vpow2.f32 %v1140_v18  ;;  %v1640_v61 = vmul.f32 1.442695, %v1639_v32  ;;  %v1443_v38 = vadd.f32 %v3402_v17, %v1439_v60  ;;  %v1469_v36 = vsel %vm1465_vm6, %v3103_v9, 0.0 }
 0x233   : > { %v1668_v20 = vadd.f32 %v1667_v46, %v1666_v0  ;;  %v1697_v15 = vadd.f32 %v1696_v57, %v1695_v30  ;;  %v1473_v35 = vadd.f32 %v3411_v6, %v1469_v36  ;;  %v1500_v24 = vsel %vm1496_vm4, %v3103_v9, 0.0  ;;  %v3554_v57 = vld [vmem:[%s2745_s13 + $0x10] sm:$0xff] }
 0x234   : > { %vm1812_vm3 = vcmp.eq.s32.totalorder %v2787_v52, %v3756_v58  ;;  %vm1842_vm14 = vcmp.eq.s32.totalorder %v2787_v52, %v3757_v62  ;;  %2368 = vpow2.f32 %v1640_v61  ;;  %v1504_v17 = vadd.f32 %v3418_v23, %v1500_v24 }
 0x235   : > { %v1442_v10 = vsel %vm1438_vm5, %v3131_v21, 0.0  ;;  %v1472_v6 = vsel %vm1468_vm8, %v3131_v21, 0.0  ;;  %v1669_v9 = vmul.f32 %v1668_v20, %v2780_v50  ;;  %v1698_v39 = vrot.slane %v1697_v15, 1 }
 0x236   : > { %v1503_v55 = vsel %vm1499_vm7, %v3131_v21, 0.0  ;;  %v1441_v23 = vsel %vm1437_vm10, %v3137_v25, 0.0  ;;  %vm1873_vm6 = vcmp.eq.s32.totalorder %v2787_v52, %v3107_v13  ;;  %vm1811_vm4 = vcmp.eq.s32.totalorder %v2804_v53, %v3756_v58 }
 0x237   : > { %v1444_v48 = vadd.f32 %v1443_v38, %v1441_v23  ;;  %v1471_v33 = vsel %vm1467_vm11, %v3137_v25, 0.0  ;;  %v1502_v21 = vsel %vm1498_vm12, %v3137_v25, 0.0  ;;  %v1814_v2 = vsel %vm1810_vm15, %v3165_v26, 0.0 }
 0x238   : > { %v1670_v37 = vmul.f32 1.442695, %v1669_v9  ;;  %v1699_v44 = vadd.f32 %v1698_v39, %v1697_v15  ;;  %v1474_v63 = vadd.f32 %v1473_v35, %v1471_v33  ;;  %v1505_v0 = vadd.f32 %v1504_v17, %v1502_v21 }
 0x239   : > { %vm1841_vm5 = vcmp.eq.s32.totalorder %v2804_v53, %v3757_v62  ;;  %vm1872_vm8 = vcmp.eq.s32.totalorder %v2804_v53, %v3107_v13  ;;  %v1445_v56 = vadd.f32 %v1444_v48, %v1442_v10  ;;  %v1844_v25 = vsel %vm1840_vm0, %v3165_v26, 0.0 }
 0x23a   : > { %v1875_v54 = vsel %vm1871_vm1, %v3165_v26, 0.0  ;;  %v1813_v30 = vsel %vm1809_vm9, %v3168_v11, 0.0  ;;  %2370 = vpow2.f32 %v1670_v37  ;;  %v1700_v18 = vmul.f32 %v1699_v44, %v2782_v51  ;;  %v2363_v60 = vpop.eup %2362 }
 0x23b   : > { %v1475_v32 = vadd.f32 %v1474_v63, %v1472_v6  ;;  %v1506_v46 = vadd.f32 %v1505_v0, %v1503_v55  ;;  %vm585_vm7 = vcmp.eq.f32.partialorder %v3554_v57, 0.0  ;;  %v1446_v61 = vrot.slane %v1445_v56, 4  ;;  %v2365_v36 = vpop.eup %2364 }
 0x23c   : > { %v1817_v38 = vadd.f32 %v1814_v2, %v1813_v30  ;;  %v1843_v8 = vsel %vm1839_vm2, %v3168_v11, 0.0  ;;  %v1874_v26 = vsel %vm1870_vm13, %v3168_v11, 0.0  ;;  %v1081_v20 = vadd.f32 1.0, %v2363_v60  ;;  %v2367_v17 = vpop.eup %2366 }
 0x23d   : > { %v1701_v15 = vmul.f32 1.442695, %v1700_v18  ;;  %v1476_v35 = vrot.slane %v1475_v32, 4  ;;  %v1507_v24 = vrot.slane %v1506_v46, 4  ;;  %v1111_v10 = vadd.f32 1.0, %v2365_v36 }
 0x23e   : > { %v1447_v6 = vadd.f32 %v1446_v61, %v1445_v56  ;;  %v1847_v9 = vadd.f32 %v1844_v25, %v1843_v8  ;;  %v1878_v39 = vadd.f32 %v1875_v54, %v1874_v26  ;;  %2372 = vrcp.f32 %v1081_v20  ;;  %v2369_v33 = vpop.eup %2368 }
 0x23f   : > { %v1142_v55 = vadd.f32 1.0, %v2367_v17  ;;  %v1477_v23 = vadd.f32 %v1476_v35, %v1475_v32  ;;  %v1508_v48 = vadd.f32 %v1507_v24, %v1506_v46  ;;  %2374 = vrcp.f32 %v1111_v10 }
 0x240   : > { %v1448_v21 = vrot.slane %v1447_v6, 2  ;;  %v1816_v5 = vsel %vm1812_vm3, %v3194_v12, 0.0  ;;  %v1846_v11 = vsel %vm1842_vm14, %v3194_v12, 0.0  ;;  %v1642_v2 = vadd.f32 1.0, %v2369_v33 }
 0x241   : > { %2376 = vrcp.f32 %v1142_v55  ;;  %v1478_v37 = vrot.slane %v1477_v23, 2  ;;  %v1509_v44 = vrot.slane %v1508_v48, 2  ;;  %v1877_v0 = vsel %vm1873_vm6, %v3194_v12, 0.0 }
 0x242   : > { %2378 = vpow2.f32 %v1701_v15  ;;  %v1449_v63 = vadd.f32 %v1448_v21, %v1447_v6  ;;  %v1815_v56 = vsel %vm1811_vm4, %v3198_v34, 0.0  ;;  %v1845_v32 = vsel %vm1841_vm5, %v3198_v34, 0.0 }
 0x243   : > { %2380 = vrcp.f32 %v1642_v2  ;;  %v1479_v25 = vadd.f32 %v1478_v37, %v1477_v23  ;;  %v1510_v54 = vadd.f32 %v1509_v44, %v1508_v48  ;;  %v1818_v30 = vadd.f32 %v1817_v38, %v1815_v56 }
 0x244   : > { %v1450_v18 = vrot.slane %v1449_v63, 1  ;;  %v1876_v52 = vsel %vm1872_vm8, %v3198_v34, 0.0  ;;  %v554_v12 = vmul.f32 %v3319_v4, %v3309_v14  ;;  %v2371_v58 = vpop.eup %2370  ;;  %v1848_v8 = vadd.f32 %v1847_v9, %v1845_v32 }
 0x245   : > { %v1480_v46 = vrot.slane %v1479_v25, 1  ;;  %v1511_v60 = vrot.slane %v1510_v54, 1  ;;  %v1819_v61 = vadd.f32 %v1818_v30, %v1816_v5  ;;  %v1672_v38 = vadd.f32 1.0, %v2371_v58 }
 0x246   : > { %v1451_v26 = vadd.f32 %v1450_v18, %v1449_v63  ;;  %v1879_v36 = vadd.f32 %v1878_v39, %v1876_v52  ;;  %v586_v62 = vsel %vm585_vm7, 1.0, %v3311_v3  ;;  %v1849_v53 = vadd.f32 %v1848_v8, %v1846_v11 }
 0x247   : > { %v1481_v15 = vadd.f32 %v1480_v46, %v1479_v25  ;;  %v1512_v35 = vadd.f32 %v1511_v60, %v1510_v54  ;;  %v1820_v24 = vrot.slane %v1819_v61, 4  ;;  %2382 = vrcp.f32 %v1672_v38 }
 0x248   : > { %v1452_v13 = vmul.f32 %v1451_v26, %v2777_v49  ;;  %v1880_v34 = vadd.f32 %v1879_v36, %v1877_v0  ;;  %v3595_v14 = vmul.f32 %v586_v62, %v554_v12  ;;  %v2373_v4 = vpop.eup %2372  ;;  %v1850_v39 = vrot.slane %v1849_v53, 4 }
 0x249   : > { %v1482_v17 = vmul.f32 %v1481_v15, %v2780_v50  ;;  %v1513_v6 = vmul.f32 %v1512_v35, %v2782_v51  ;;  %v1821_v9 = vadd.f32 %v1820_v24, %v1819_v61  ;;  %v2375_v23 = vpop.eup %2374  ;;  %v1083_v48 = vmul.f32 %v2373_v4, %v1081_v20 }
 0x24a   : > { %v1453_v3 = vmul.f32 1.442695, %v1452_v13  ;;  %v1881_v33 = vrot.slane %v1880_v34, 4  ;;  %v743_v21 = vmul.f32 %v3469_v7, %v3452_v16  ;;  %v1113_v11 = vmul.f32 %v2375_v23, %v1111_v10 }
 0x24b   : > { %v2377_v5 = vpop.eup %2376  ;;  %v1483_v37 = vmul.f32 1.442695, %v1482_v17  ;;  %v1514_v44 = vmul.f32 1.442695, %v1513_v6  ;;  %v1822_v63 = vrot.slane %v1821_v9, 2  ;;  %v1084_v56 = vsub.f32 2.0, %v1083_v48 }
 0x24c   : > { %v2379_v0 = vpop.eup %2378  ;;  %v1144_v25 = vmul.f32 %v2377_v5, %v1142_v55  ;;  %2384 = vpow2.f32 %v1453_v3  ;;  %v1851_v54 = vadd.f32 %v1850_v39, %v1849_v53  ;;  %v1114_v18 = vsub.f32 2.0, %v1113_v11 }
 0x24d   : > { %v2381_v30 = vpop.eup %2380  ;;  %v3601_v32 = vadd.f32 1.0, %v2379_v0  ;;  %2386 = vpow2.f32 %v1483_v37  ;;  %v1823_v20 = vadd.f32 %v1822_v63, %v1821_v9  ;;  %v1085_v52 = vmul.f32 %v2373_v4, %v1084_v56 }
 0x24e   : > { %v1145_v12 = vsub.f32 2.0, %v1144_v25  ;;  %v1644_v58 = vmul.f32 %v2381_v30, %v1642_v2  ;;  %2388 = vpow2.f32 %v1514_v44  ;;  %v1115_v16 = vmul.f32 %v2375_v23, %v1114_v18 }
 0x24f   : > { %2390 = vrcp.f32 %v3601_v32  ;;  %v1824_v7 = vrot.slane %v1823_v20, 1  ;;  %v1852_v10 = vrot.slane %v1851_v54, 2  ;;  %v1882_v46 = vadd.f32 %v1881_v33, %v1880_v34 }
 0x250   : > { %v773_v55 = vsel %vm585_vm7, 1.0, %v3454_v19  ;;  %vm3758_vm13 = vcmp.eq.f32.partialorder %v2750_v40, 0.0  ;;  %vm3759_vm14 = vcmp.eq.f32.partialorder %v2756_v42, 0.0  ;;  %v960_v35 = vsel %vm585_vm7, 1.0, %v3334_v28 }
 0x251   : > { %v899_v60 = vsel %vm3758_vm13, 1.0, %v3321_v43  ;;  %v929_v61 = vsel %vm3759_vm14, 1.0, %v3324_v22  ;;  %v1825_v2 = vadd.f32 %v1824_v7, %v1823_v20  ;;  %v1853_v8 = vadd.f32 %v1852_v10, %v1851_v54  ;;  %v2383_v62 = vpop.eup %2382  ;;  %vm3760_vm10 = vmmov %vm3758_vm13 }
 0x252   : > { %v774_v26 = vmul.f32 %v773_v55, %v743_v21  ;;  %v930_v36 = vmul.f32 %v929_v61, %v899_v60  ;;  %v1883_v15 = vrot.slane %v1882_v46, 2  ;;  %v1086_v19 = vsel %vm3760_vm10, 1.0, %v1085_v52  ;;  %vm3761_vm11 = vmmov %vm3759_vm14 }
 0x253   : > { %v1116_v43 = vsel %vm3761_vm11, 1.0, %v1115_v16  ;;  %v1674_v24 = vmul.f32 %v2383_v62, %v1672_v38  ;;  %v1826_v53 = vmul.f32 %v1825_v2, %v2777_v49  ;;  %v1854_v22 = vrot.slane %v1853_v8, 1  ;;  %vm3762_vm12 = vmmov %vm3760_vm10 }
 0x254   : > { %v961_v13 = vmul.f32 %v960_v35, %v930_v36  ;;  %v1884_v34 = vadd.f32 %v1883_v15, %v1882_v46  ;;  %v1117_v4 = vmul.f32 %v1116_v43, %v1086_v19  ;;  %v1146_v17 = vmul.f32 %v2377_v5, %v1145_v12  ;;  %vm3763_vm15 = vmmov %vm3761_vm11 }
 0x255   : > { %v1272_v6 = vmul.f32 %v3426_v45, %v1271_v41  ;;  %v1827_v9 = vmul.f32 1.442695, %v1826_v53  ;;  %v1855_v28 = vadd.f32 %v1854_v22, %v1853_v8  ;;  %v1302_v39 = vmul.f32 %v3446_v1, %v1301_v47  ;;  %vm3764_vm0 = vmmov %vm3760_vm10 }
 0x256   : > { %v1332_v23 = vsub.f32 2.0, %v3481_v27  ;;  %v2385_v38 = vpop.eup %2384  ;;  %v1885_v48 = vrot.slane %v1884_v34, 1  ;;  %v1147_v49 = vsel %vm585_vm7, 1.0, %v1146_v17  ;;  %v1645_v33 = vsub.f32 2.0, %v1644_v58  ;;  %vm3765_vm6 = vmmov %vm3761_vm11 }
 0x257   : > { %v1273_v3 = vsel %vm3762_vm12, 1.0, %v1272_v6  ;;  %v2387_v59 = vpop.eup %2386  ;;  %v1455_v21 = vadd.f32 1.0, %v2385_v38  ;;  %2392 = vpow2.f32 %v1827_v9  ;;  %v1856_v45 = vmul.f32 %v1855_v28, %v2780_v50  ;;  %vm3766_vm4 = vmmov %vm3764_vm0 }
 0x258   : > { %v1148_v41 = vmul.f32 %v1147_v49, %v1117_v4  ;;  %v2389_v29 = vpop.eup %2388  ;;  %v1485_v5 = vadd.f32 1.0, %v2387_v59  ;;  %v1886_v1 = vadd.f32 %v1885_v48, %v1884_v34  ;;  %v1303_v47 = vsel %vm3763_vm15, 1.0, %v1302_v39  ;;  %vm3767_vm5 = vmmov %vm3765_vm6 }
 0x259   : > { %v1333_v27 = vmul.f32 %v3472_v31, %v1332_v23  ;;  %v2391_v11 = vpop.eup %2390  ;;  %2394 = vrcp.f32 %v1455_v21  ;;  %v1516_v37 = vadd.f32 1.0, %v2389_v29  ;;  %v1857_v44 = vmul.f32 1.442695, %v1856_v45  ;;  %vm3768_vm14 = vmmov %vm3764_vm0 }
 0x25a   : > { %v1304_v63 = vmul.f32 %v1303_v47, %v1273_v3  ;;  %2396 = vrcp.f32 %v1485_v5  ;;  %v1887_v0 = vmul.f32 %v1886_v1, %v2782_v51  ;;  %v1646_v56 = vmul.f32 %v2381_v30, %v1645_v33  ;;  %vm3769_vm10 = vmmov %vm3767_vm5 }
 0x25b   : > { %v1334_v50 = vsel %vm585_vm7, 1.0, %v1333_v27  ;;  %2398 = vrcp.f32 %v1516_v37  ;;  %v1675_v54 = vsub.f32 2.0, %v1674_v24  ;;  %v1705_v18 = vmul.f32 %v2391_v11, %v3601_v32 }
 0x25c   : > { %v1335_v25 = vmul.f32 %v1334_v50, %v1304_v63  ;;  %2400 = vpow2.f32 %v1857_v44  ;;  %v1888_v20 = vmul.f32 1.442695, %v1887_v0  ;;  %v1647_v31 = vsel %vm3764_vm0, 1.0, %v1646_v56 }
 0x25d   : > { %vm1897_vm1 = vcmask 1040384   ;;  %v1676_v52 = vmul.f32 %v2383_v62, %v1675_v54  ;;  %v1706_v12 = vsub.f32 2.0, %v1705_v18  ;;  %vm1899_vm9 = vcmask 1041408  }
 0x25e   : > { %v1898_v58 = vsel %vm1897_vm1, %v3595_v14, %v774_v26  ;;  %2402 = vpow2.f32 %v1888_v20  ;;  %vm1901_vm2 = vcmask 1042432   ;;  %vm1903_vm3 = vcmask 1043456  }
 0x25f   : > { %v1900_v51 = vsel %vm1899_vm9, %v1898_v58, %v961_v13  ;;  %v1677_v30 = vsel %vm3765_vm6, 1.0, %v1676_v52  ;;  %v1707_v16 = vmul.f32 %v2391_v11, %v1706_v12  ;;  %vm1905_vm8 = vcmask 1044480  }
 0x260   : > { %v1902_v32 = vsel %vm1901_vm2, %v1900_v51, %v1148_v41  ;;  %v1678_v7 = vmul.f32 %v1677_v30, %v1647_v31  ;;  %vm1907_vm13 = vcmask 1045504   ;;  %vm1909_vm11 = vcmask 1046528  }
 0x261   : > { %v1904_v10 = vsel %vm1903_vm3, %v1902_v32, %v1335_v25  ;;  %v2393_v46 = vpop.eup %2392  ;;  %v1708_v55 = vsel %vm585_vm7, 1.0, %v1707_v16 }
 0x262   : > { %v1829_v60 = vadd.f32 1.0, %v2393_v46  ;;  %v1709_v61 = vmul.f32 %v1708_v55, %v1678_v7 }
 0x263   : > { %v2395_v2 = vpop.eup %2394 }
 0x264   : > { %v2397_v14 = vpop.eup %2396  ;;  %v1457_v8 = vmul.f32 %v2395_v2, %v1455_v21  ;;  %2404 = vrcp.f32 %v1829_v60 }
 0x265   : > { %v2399_v26 = vpop.eup %2398  ;;  %v1487_v36 = vmul.f32 %v2397_v14, %v1485_v5 }
 0x266   : > { %v2401_v62 = vpop.eup %2400  ;;  %v1458_v15 = vsub.f32 2.0, %v1457_v8  ;;  %v1518_v35 = vmul.f32 %v2399_v26, %v1516_v37 }
 0x267   : > { %v1859_v19 = vadd.f32 1.0, %v2401_v62  ;;  %v1488_v43 = vsub.f32 2.0, %v1487_v36 }
 0x268   : > { %v2403_v24 = vpop.eup %2402  ;;  %v1459_v53 = vmul.f32 %v2395_v2, %v1458_v15  ;;  %v1519_v22 = vsub.f32 2.0, %v1518_v35 }
 0x269   : > { %2406 = vrcp.f32 %v1859_v19  ;;  %v1489_v13 = vmul.f32 %v2397_v14, %v1488_v43  ;;  %v1890_v34 = vadd.f32 1.0, %v2403_v24 }
 0x26a   : > { %v1460_v4 = vsel %vm3766_vm4, 1.0, %v1459_v53  ;;  %v1520_v17 = vmul.f32 %v2399_v26, %v1519_v22 }
 0x26b   : > { %v1490_v6 = vsel %vm3767_vm5, 1.0, %v1489_v13  ;;  %2408 = vrcp.f32 %v1890_v34 }
 0x26c   : > { %v1491_v9 = vmul.f32 %v1490_v6, %v1460_v4  ;;  %v1521_v28 = vsel %vm585_vm7, 1.0, %v1520_v17 }
 0x26e   : > { %v2405_v39 = vpop.eup %2404  ;;  %v1522_v23 = vmul.f32 %v1521_v28, %v1491_v9 }
 0x26f   : > { %v1831_v38 = vmul.f32 %v2405_v39, %v1829_v60 }
 0x270   : > { %v1906_v48 = vsel %vm1905_vm8, %v1904_v10, %v1522_v23 }
 0x271   : > { %v1832_v49 = vsub.f32 2.0, %v1831_v38  ;;  %v1908_v3 = vsel %vm1907_vm13, %v1906_v48, %v1709_v61 }
 0x273   : > { %v2407_v33 = vpop.eup %2406  ;;  %v1833_v59 = vmul.f32 %v2405_v39, %v1832_v49 }
 0x274   : > { %v1861_v21 = vmul.f32 %v2407_v33, %v1859_v19 }
 0x275   : > { %v2409_v45 = vpop.eup %2408  ;;  %v1834_v41 = vsel %vm3768_vm14, 1.0, %v1833_v59 }
 0x276   : > { %v1862_v29 = vsub.f32 2.0, %v1861_v21  ;;  %v1892_v5 = vmul.f32 %v2409_v45, %v1890_v34 }
 0x278   : > { %v1863_v1 = vmul.f32 %v2407_v33, %v1862_v29  ;;  %v1893_v47 = vsub.f32 2.0, %v1892_v5 }
 0x27a   : > { %v1864_v27 = vsel %vm3769_vm10, 1.0, %v1863_v1  ;;  %v1894_v11 = vmul.f32 %v2409_v45, %v1893_v47 }
 0x27b   : > { %v1865_v37 = vmul.f32 %v1864_v27, %v1834_v41 }
 0x27c   : > { %v1895_v44 = vsel %vm585_vm7, 1.0, %v1894_v11 }
 0x27d   : > { %v1896_v63 = vmul.f32 %v1895_v44, %v1865_v37 }
 0x27f   : > { %v1910_v40 = vsel %vm1909_vm11, %v1908_v3, %v1896_v63 }
 0x280   : > { %1911 = vst [vmem:[%s245_s16] sm:$0xff] %v1910_v40 }
 0x281   : > { %2424 = shalt.err (!%p2421_p3)
}
 0x282   : > { %s2425_s9 = scalar_lea.hbm %s3664_s26, 128  ;;  %s2429_s13 = scalar_lea.hbm %s3711_s5, 256 }
 0x283   : > { %p2426_p4 = scmp.ne.s32.totalorder %s3664_s26, %s2425_s9  ;;  %p2430_p9 = scmp.lt.u32.totalorder %s3664_s26, %s3711_s5 }
 0x284   : > { %p2431_p10 = scmp.lt.u32.totalorder %s2429_s13, %s2425_s9  ;;  %p2433_p12 = scmp.lt.u32.totalorder %s2425_s9, %s3664_s26 }
 0x285   : > { %p2427_p7 = pnand %p2426_p4, %p2545_p5 }
 0x286   : > { %p2432_p11 = por %p2431_p10, %p2430_p9 }
 0x287   : > { %p2428_p8 = pneg %p2427_p7 }
 0x288   : > { %p2434_p13 = por %p2433_p12, %p2432_p11 }
 0x28a   : > { %p2435_p0 = pnand %p2434_p13, %p2428_p8 }
 0x28c   : > { %2438 = shalt.err (!%p2435_p0)
}
 0x28d   : > { %2274 = dma.vmem_to_hbm [thread:$0]  (%p2545_p5), %s3666_s17, 128, %s3664_s26, %s1913_s22  }
 0x28e PF: > { %p2280_p1 = scmp.ge.s32.totalorder %s2473_s21, 2  ;;  %s1938_s15 = sand.u32 1, %s2461_s18  }
 0x28f   : > { %s1939_s16 = scalar_lea.sflag [#allocation3], %s1938_s15 }
 0x290   : > { %p2277_p2 = pnand %p2280_p1, %p2549_p6 }
 0x292   : > { %2456 = dma.done.wait (!%p2277_p2), %s1939_s16, 128  }
 0x293   : > { %2458 = vsyncadd (!%p2277_p2), %s1939_s16, 4294967168  ;;  %p15_p3 = scmp.ge.s32.totalorder %s2532_s24, 4   ;;  %s3770_s18 = smov %s2465_s19 }
 0x294   : > { %s3771_s19 = smov %s2469_s20  ;;  %s3772_s20 = smov %s2543_s27 }
 0x295   : > { %s3773_s21 = smov %s2532_s24  ;;  %17 = sbr.rel (!%p15_p3) target bundleno = 3 (0x3), region = 81 }
 0x29c   :  { %1944 = vsyncpa [#allocation3], 1 }
 0x29d   :  { %1946 = vsyncpa [#allocation3 + $0x1], 1 }

</bundles_post_ra>
